<compile_context>
chip_gen: v7x
topology: tpu7x:2x2x1
jax: 0.10.0
libtpu: 0.0.40
codegen_flags: <defaults>
</compile_context>

<pallas_src>
import jax
import jax.numpy as jnp
from jax.experimental import pallas as pl
from jax.experimental.pallas import tpu as pltpu


LANES = 128  # lane-dense width of the packed parameter slab


# ----------------------------- slab layout ------------------------------------
def _slab_layout(vocab_size, hidden_dim):
    """Row offsets of each parameter block inside the single packed [rows, 128] slab."""
    v_pad = ((vocab_size + 7) // 8) * 8
    off = {
        "ep":   0,                          # projected embedding table [V, H] (+bias folded)
        "whh0": v_pad,                      # W_hh_l0^T  [H, H]
        "wih1": v_pad + hidden_dim,         # W_ih_l1^T  [H, H]
        "whh1": v_pad + 2 * hidden_dim,     # W_hh_l1^T  [H, H]
        "wih2": v_pad + 3 * hidden_dim,     # W_ih_l2^T  [H, H]
        "whh2": v_pad + 4 * hidden_dim,     # W_hh_l2^T  [H, H]
        "wlin": v_pad + 5 * hidden_dim,     # linear W^T [H, O]
        "bias": v_pad + 6 * hidden_dim,     # row +0: b1, +1: b2, +2: lin_b
    }
    rows = ((off["bias"] + 3 + 7) // 8) * 8
    return off, rows


# ----------------------------- Pallas kernel ----------------------------------
def _build_kernel(B, T, H, O, off):
    OFF_EP, OFF_WHH0 = off["ep"], off["whh0"]
    OFF_WIH1, OFF_WHH1 = off["wih1"], off["whh1"]
    OFF_WIH2, OFF_WHH2 = off["wih2"], off["whh2"]
    OFF_WLIN, OFF_BIAS = off["wlin"], off["bias"]
    bf16, f32 = jnp.bfloat16, jnp.float32

    def kernel(tokens_ref, slab_ref, out_ref):
        # tokens_ref: [B, T] int32 in SMEM
        # slab_ref:   [rows, 128] f32 in VMEM (single packed parameter slab, one DMA)
        # out_ref:    [B, O] f32 in VMEM

        # ---- unpack the packed parameter slab (static ref slices, prologue only) ----
        whh0 = slab_ref[OFF_WHH0:OFF_WHH0 + H, 0:H].astype(bf16)
        wih1 = slab_ref[OFF_WIH1:OFF_WIH1 + H, 0:H].astype(bf16)
        whh1 = slab_ref[OFF_WHH1:OFF_WHH1 + H, 0:H].astype(bf16)
        wih2 = slab_ref[OFF_WIH2:OFF_WIH2 + H, 0:H].astype(bf16)
        whh2 = slab_ref[OFF_WHH2:OFF_WHH2 + H, 0:H].astype(bf16)
        wlin = slab_ref[OFF_WLIN:OFF_WLIN + H, 0:O].astype(bf16)
        b1 = jnp.broadcast_to(slab_ref[OFF_BIAS + 0:OFF_BIAS + 1, 0:H], (B, H))  # f32
        b2 = jnp.broadcast_to(slab_ref[OFF_BIAS + 1:OFF_BIAS + 2, 0:H], (B, H))  # f32
        blin = jnp.broadcast_to(slab_ref[OFF_BIAS + 2:OFF_BIAS + 3, 0:O], (B, O))

        # ---- fused embedding lookup + layer-0 input projection ----
        # ep[v] = emb[v] @ W_ih0^T + (b_ih0 + b_hh0) is precomputed on the host and
        # lives in the slab, so each token's layer-0 input is one dynamic row load.
        def xrow(b, t):
            idx = OFF_EP + tokens_ref[b, t]
            return slab_ref[pl.ds(idx, 1), :][:, 0:H]            # [1, H] f32

        xp = [jnp.concatenate([xrow(b, t) for b in range(B)], axis=0)  # [B, H] f32
              for t in range(T)]

        # ---- 3-layer tanh recurrence, fully unrolled over T ----
        # t = 0: previous state is exactly zero -> skip the recurrent matmuls.
        h1 = jnp.tanh(xp[0]).astype(bf16)
        h2 = jnp.tanh(jnp.dot(h1, wih1, preferred_element_type=f32) + b1).astype(bf16)
        h3 = jnp.tanh(jnp.dot(h2, wih2, preferred_element_type=f32) + b2).astype(bf16)

        for t in range(1, T):
            # Recurrent halves only need the t-1 state: issue their matmuls first so
            # the scheduler pulls them off the tanh -> matmul dependent chain.
            r1 = jnp.dot(h1, whh0, preferred_element_type=f32)
            r2 = jnp.dot(h2, whh1, preferred_element_type=f32)
            r3 = jnp.dot(h3, whh2, preferred_element_type=f32)
            h1 = jnp.tanh(xp[t] + r1).astype(bf16)
            h2 = jnp.tanh(jnp.dot(h1, wih1, preferred_element_type=f32)
                          + r2 + b1).astype(bf16)
            h3 = jnp.tanh(jnp.dot(h2, wih2, preferred_element_type=f32)
                          + r3 + b2).astype(bf16)

        # ---- final linear on the last timestep of the top layer ----
        out_ref[...] = jnp.dot(h3, wlin, preferred_element_type=f32) + blin

    return kernel


# ------------------------------ Python wrapper ---------------------------------
def simple_network_forward(tokens, params):
    """tokens: int32 [B, T]. Returns float32 [B, output_dim].

    (PyTorch's .squeeze() would also drop the batch dim for B == 1; here we always
     return [B, O], matching the B > 1 behavior.)"""
    B, T = tokens.shape
    H, O = params["hidden_dim"], params["output_dim"]
    kernel = _build_kernel(B, T, H, O, params["slab_off"])
    return pl.pallas_call(
        kernel,
        out_shape=jax.ShapeDtypeStruct((B, O), jnp.float32),
        in_specs=[pl.BlockSpec(memory_space=pltpu.MemorySpace.SMEM),   # tokens
                  pl.BlockSpec(memory_space=pltpu.MemorySpace.VMEM)],  # packed slab
        out_specs=pl.BlockSpec(memory_space=pltpu.MemorySpace.VMEM),
        compiler_params=pltpu.CompilerParams(vmem_limit_bytes=32 * 1024 * 1024),
    )(tokens, params["slab"])


# --------------------------- deterministic params -------------------------------
def make_params(vocab_size, embed_dim, hidden_dim, output_dim):
    key = jax.random.PRNGKey(0)
    ks = jax.random.split(key, 16)
    k = 1.0 / jnp.sqrt(hidden_dim)

    def u(kk, shape, scale):
        return jax.random.uniform(kk, shape, jnp.float32, -scale, scale)

    # PyTorch param shapes: weight_ih_l0 [H,E], weight_hh_l* [H,H],
    # weight_ih_l{1,2} [H,H], biases [H]; Linear weight [O,H], bias [O].
    emb = jax.random.normal(ks[0], (vocab_size, embed_dim), jnp.float32)
    w_ih0 = u(ks[1], (hidden_dim, embed_dim), k)
    w_hh0 = u(ks[2], (hidden_dim, hidden_dim), k)
    b_ih0 = u(ks[3], (hidden_dim,), k)
    b_hh0 = u(ks[4], (hidden_dim,), k)
    w_ih1 = u(ks[5], (hidden_dim, hidden_dim), k)
    w_hh1 = u(ks[6], (hidden_dim, hidden_dim), k)
    b_ih1 = u(ks[7], (hidden_dim,), k)
    b_hh1 = u(ks[8], (hidden_dim,), k)
    w_ih2 = u(ks[9], (hidden_dim, hidden_dim), k)
    w_hh2 = u(ks[10], (hidden_dim, hidden_dim), k)
    b_ih2 = u(ks[11], (hidden_dim,), k)
    b_hh2 = u(ks[12], (hidden_dim,), k)
    lin_w = u(ks[13], (output_dim, hidden_dim), k)
    lin_b = u(ks[14], (output_dim,), k)

    H, O = hidden_dim, output_dim
    off, rows = _slab_layout(vocab_size, hidden_dim)

    # Embedding and layer-0 input projection folded into one lookup table (bias baked in).
    ep = emb @ w_ih0.T + (b_ih0 + b_hh0)[None, :]                 # [V, H]

    # Single lane-dense packed parameter slab -> one prologue DMA in the kernel.
    slab = jnp.zeros((rows, LANES), jnp.float32)
    slab = slab.at[off["ep"]:off["ep"] + vocab_size, :H].set(ep)
    slab = slab.at[off["whh0"]:off["whh0"] + H, :H].set(w_hh0.T)
    slab = slab.at[off["wih1"]:off["wih1"] + H, :H].set(w_ih1.T)
    slab = slab.at[off["whh1"]:off["whh1"] + H, :H].set(w_hh1.T)
    slab = slab.at[off["wih2"]:off["wih2"] + H, :H].set(w_ih2.T)
    slab = slab.at[off["whh2"]:off["whh2"] + H, :H].set(w_hh2.T)
    slab = slab.at[off["wlin"]:off["wlin"] + H, :O].set(lin_w.T)
    slab = slab.at[off["bias"] + 0, :H].set(b_ih1 + b_hh1)
    slab = slab.at[off["bias"] + 1, :H].set(b_ih2 + b_hh2)
    slab = slab.at[off["bias"] + 2, :O].set(lin_b)

    return {
        # kernel-side
        "slab": slab, "slab_off": off,
        "hidden_dim": H, "output_dim": O, "vocab_size": vocab_size,
        # reference-side (raw, PyTorch-shaped)
        "embedding": emb,
        "w_ih0": w_ih0, "w_hh0": w_hh0, "b_ih0": b_ih0, "b_hh0": b_hh0,
        "w_ih1": w_ih1, "w_hh1": w_hh1, "b_ih1": b_ih1, "b_hh1": b_hh1,
        "w_ih2": w_ih2, "w_hh2": w_hh2, "b_ih2": b_ih2, "b_hh2": b_hh2,
        "lin_w": lin_w, "lin_b": lin_b,
    }


# ------------------------------ references --------------------------------------
def reference_forward_f32(tokens, params):
    """PyTorch-faithful float32 reference."""
    x = jnp.take(params["embedding"], tokens, axis=0)             # [B, T, E]
    B, T, _ = x.shape
    H = params["hidden_dim"]
    h1 = h2 = h3 = jnp.zeros((B, H), jnp.float32)
    for t in range(T):
        xt = x[:, t, :]
        h1 = jnp.tanh(xt @ params["w_ih0"].T + h1 @ params["w_hh0"].T
                      + params["b_ih0"] + params["b_hh0"])
        h2 = jnp.tanh(h1 @ params["w_ih1"].T + h2 @ params["w_hh1"].T
                      + params["b_ih1"] + params["b_hh1"])
        h3 = jnp.tanh(h2 @ params["w_ih2"].T + h3 @ params["w_hh2"].T
                      + params["b_ih2"] + params["b_hh2"])
    return h3 @ params["lin_w"].T + params["lin_b"]


def reference_forward_matched(tokens, params):
    """Mirrors the kernel's bf16-operand / f32-accumulate math (tight correctness check)."""
    B, T = tokens.shape
    H, O = params["hidden_dim"], params["output_dim"]
    off, slab = params["slab_off"], params["slab"]
    bf16, f32 = jnp.bfloat16, jnp.float32

    whh0 = slab[off["whh0"]:off["whh0"] + H, :H].astype(bf16)
    wih1 = slab[off["wih1"]:off["wih1"] + H, :H].astype(bf16)
    whh1 = slab[off["whh1"]:off["whh1"] + H, :H].astype(bf16)
    wih2 = slab[off["wih2"]:off["wih2"] + H, :H].astype(bf16)
    whh2 = slab[off["whh2"]:off["whh2"] + H, :H].astype(bf16)
    wlin = slab[off["wlin"]:off["wlin"] + H, :O].astype(bf16)
    b1 = slab[off["bias"] + 0, :H]
    b2 = slab[off["bias"] + 1, :H]
    blin = slab[off["bias"] + 2, :O]
    ep = slab[off["ep"]:off["ep"] + params["vocab_size"], :H]     # f32, bias folded
    xp = jnp.take(ep, tokens, axis=0)                             # [B, T, H]

    h1 = h2 = h3 = jnp.zeros((B, H), bf16)
    for t in range(T):
        r1 = jnp.dot(h1, whh0, preferred_element_type=f32)
        r2 = jnp.dot(h2, whh1, preferred_element_type=f32)
        r3 = jnp.dot(h3, whh2, preferred_element_type=f32)
        h1 = jnp.tanh(xp[:, t, :] + r1).astype(bf16)
        h2 = jnp.tanh(jnp.dot(h1, wih1, preferred_element_type=f32) + r2 + b1).astype(bf16)
        h3 = jnp.tanh(jnp.dot(h2, wih2, preferred_element_type=f32) + r3 + b2).astype(bf16)
    return jnp.dot(h3, wlin, preferred_element_type=f32) + blin


if __name__ == "__main__":
    vocab_size, embed_dim, hidden_dim, output_dim = 50, 16, 8, 4
    B, T = 2, 8

    params = make_params(vocab_size, embed_dim, hidden_dim, output_dim)
    tokens = jax.random.randint(jax.random.PRNGKey(0), (B, T), 0, vocab_size,
                                dtype=jnp.int32)

    out = simple_network_forward(tokens, params)
    out = jax.block_until_ready(out)
    assert out.shape == (B, output_dim)

    ref_matched = reference_forward_matched(tokens, params)
    ref_f32 = reference_forward_f32(tokens, params)
    # Tight check vs. a reference using the same bf16-operand/f32-accumulate math as
    # the kernel; loose check vs. the pure-f32 (PyTorch-faithful) reference, since
    # bf16 MXU operands were adopted per the perf review (expected ~1e-2-level drift).
    assert jnp.allclose(out, ref_matched, atol=2e-2, rtol=2e-2), \
        "mismatch vs matched-precision reference"
    assert jnp.allclose(out, ref_f32, atol=1e-1, rtol=1e-1), \
        "drift vs float32 reference too large"

    print("KERNEL_OK")
</pallas_src>

<mosaic_0001>
module attributes {stable_mosaic.version = 11 : i64} {
  func.func @kernel(%arg0: memref<2x8xi32, #tpu.memory_space<smem>>, %arg1: memref<112x128xf32, #tpu.memory_space<vmem>>, %arg2: memref<2x4xf32, #tpu.memory_space<vmem>>) attributes {dimension_semantics = [], scalar_prefetch = 0 : i64, scratch_operands = 0 : i64, tpu.core_type = #tpu.core_type<tc>} {
    %c56 = arith.constant 56 : index
    %c0 = arith.constant 0 : index
    %0 = vector.load %arg1[%c56, %c0] : memref<112x128xf32, #tpu.memory_space<vmem>>, vector<8x8xf32>
    %1 = arith.truncf %0 : vector<8x8xf32> to vector<8x8xbf16>
    %c64 = arith.constant 64 : index
    %c0_0 = arith.constant 0 : index
    %2 = vector.load %arg1[%c64, %c0_0] : memref<112x128xf32, #tpu.memory_space<vmem>>, vector<8x8xf32>
    %3 = arith.truncf %2 : vector<8x8xf32> to vector<8x8xbf16>
    %c72 = arith.constant 72 : index
    %c0_1 = arith.constant 0 : index
    %4 = vector.load %arg1[%c72, %c0_1] : memref<112x128xf32, #tpu.memory_space<vmem>>, vector<8x8xf32>
    %5 = arith.truncf %4 : vector<8x8xf32> to vector<8x8xbf16>
    %c80 = arith.constant 80 : index
    %c0_2 = arith.constant 0 : index
    %6 = vector.load %arg1[%c80, %c0_2] : memref<112x128xf32, #tpu.memory_space<vmem>>, vector<8x8xf32>
    %7 = arith.truncf %6 : vector<8x8xf32> to vector<8x8xbf16>
    %c88 = arith.constant 88 : index
    %c0_3 = arith.constant 0 : index
    %8 = vector.load %arg1[%c88, %c0_3] : memref<112x128xf32, #tpu.memory_space<vmem>>, vector<8x8xf32>
    %9 = arith.truncf %8 : vector<8x8xf32> to vector<8x8xbf16>
    %c96 = arith.constant 96 : index
    %c0_4 = arith.constant 0 : index
    %10 = vector.load %arg1[%c96, %c0_4] : memref<112x128xf32, #tpu.memory_space<vmem>>, vector<8x4xf32>
    %11 = arith.truncf %10 : vector<8x4xf32> to vector<8x4xbf16>
    %c104 = arith.constant 104 : index
    %c0_5 = arith.constant 0 : index
    %12 = vector.load %arg1[%c104, %c0_5] : memref<112x128xf32, #tpu.memory_space<vmem>>, vector<1x8xf32>
    %13 = vector.shape_cast %12 : vector<1x8xf32> to vector<1x8xf32>
    %14 = vector.broadcast %13 : vector<1x8xf32> to vector<2x8xf32>
    %c105 = arith.constant 105 : index
    %c0_6 = arith.constant 0 : index
    %15 = vector.load %arg1[%c105, %c0_6] : memref<112x128xf32, #tpu.memory_space<vmem>>, vector<1x8xf32>
    %16 = vector.shape_cast %15 : vector<1x8xf32> to vector<1x8xf32>
    %17 = vector.broadcast %16 : vector<1x8xf32> to vector<2x8xf32>
    %c106 = arith.constant 106 : index
    %c0_7 = arith.constant 0 : index
    %18 = vector.load %arg1[%c106, %c0_7] : memref<112x128xf32, #tpu.memory_space<vmem>>, vector<1x4xf32>
    %19 = vector.shape_cast %18 : vector<1x4xf32> to vector<1x4xf32>
    %20 = vector.broadcast %19 : vector<1x4xf32> to vector<2x4xf32>
    %c0_8 = arith.constant 0 : index
    %c0_9 = arith.constant 0 : index
    %21 = memref.load %arg0[%c0_8, %c0_9] : memref<2x8xi32, #tpu.memory_space<smem>>
    %c0_i32 = arith.constant 0 : i32
    %22 = arith.addi %c0_i32, %21 : i32
    %23 = arith.index_cast %22 : i32 to index
    %c0_10 = arith.constant 0 : index
    %24 = vector.load %arg1[%23, %c0_10] : memref<112x128xf32, #tpu.memory_space<vmem>>, vector<1x128xf32>
    %25 = vector.extract_strided_slice %24 {offsets = [0, 0], sizes = [1, 8], strides = [1, 1]} : vector<1x128xf32> to vector<1x8xf32>
    %c1 = arith.constant 1 : index
    %c0_11 = arith.constant 0 : index
    %26 = memref.load %arg0[%c1, %c0_11] : memref<2x8xi32, #tpu.memory_space<smem>>
    %c0_i32_12 = arith.constant 0 : i32
    %27 = arith.addi %c0_i32_12, %26 : i32
    %28 = arith.index_cast %27 : i32 to index
    %c0_13 = arith.constant 0 : index
    %29 = vector.load %arg1[%28, %c0_13] : memref<112x128xf32, #tpu.memory_space<vmem>>, vector<1x128xf32>
    %30 = vector.extract_strided_slice %29 {offsets = [0, 0], sizes = [1, 8], strides = [1, 1]} : vector<1x128xf32> to vector<1x8xf32>
    %31 = tpu.concatenate %25, %30 in 0 : vector<1x8xf32>, vector<1x8xf32> -> vector<2x8xf32>
    %c0_14 = arith.constant 0 : index
    %c1_15 = arith.constant 1 : index
    %32 = memref.load %arg0[%c0_14, %c1_15] : memref<2x8xi32, #tpu.memory_space<smem>>
    %c0_i32_16 = arith.constant 0 : i32
    %33 = arith.addi %c0_i32_16, %32 : i32
    %34 = arith.index_cast %33 : i32 to index
    %c0_17 = arith.constant 0 : index
    %35 = vector.load %arg1[%34, %c0_17] : memref<112x128xf32, #tpu.memory_space<vmem>>, vector<1x128xf32>
    %36 = vector.extract_strided_slice %35 {offsets = [0, 0], sizes = [1, 8], strides = [1, 1]} : vector<1x128xf32> to vector<1x8xf32>
    %c1_18 = arith.constant 1 : index
    %c1_19 = arith.constant 1 : index
    %37 = memref.load %arg0[%c1_18, %c1_19] : memref<2x8xi32, #tpu.memory_space<smem>>
    %c0_i32_20 = arith.constant 0 : i32
    %38 = arith.addi %c0_i32_20, %37 : i32
    %39 = arith.index_cast %38 : i32 to index
    %c0_21 = arith.constant 0 : index
    %40 = vector.load %arg1[%39, %c0_21] : memref<112x128xf32, #tpu.memory_space<vmem>>, vector<1x128xf32>
    %41 = vector.extract_strided_slice %40 {offsets = [0, 0], sizes = [1, 8], strides = [1, 1]} : vector<1x128xf32> to vector<1x8xf32>
    %42 = tpu.concatenate %36, %41 in 0 : vector<1x8xf32>, vector<1x8xf32> -> vector<2x8xf32>
    %c0_22 = arith.constant 0 : index
    %c2 = arith.constant 2 : index
    %43 = memref.load %arg0[%c0_22, %c2] : memref<2x8xi32, #tpu.memory_space<smem>>
    %c0_i32_23 = arith.constant 0 : i32
    %44 = arith.addi %c0_i32_23, %43 : i32
    %45 = arith.index_cast %44 : i32 to index
    %c0_24 = arith.constant 0 : index
    %46 = vector.load %arg1[%45, %c0_24] : memref<112x128xf32, #tpu.memory_space<vmem>>, vector<1x128xf32>
    %47 = vector.extract_strided_slice %46 {offsets = [0, 0], sizes = [1, 8], strides = [1, 1]} : vector<1x128xf32> to vector<1x8xf32>
    %c1_25 = arith.constant 1 : index
    %c2_26 = arith.constant 2 : index
    %48 = memref.load %arg0[%c1_25, %c2_26] : memref<2x8xi32, #tpu.memory_space<smem>>
    %c0_i32_27 = arith.constant 0 : i32
    %49 = arith.addi %c0_i32_27, %48 : i32
    %50 = arith.index_cast %49 : i32 to index
    %c0_28 = arith.constant 0 : index
    %51 = vector.load %arg1[%50, %c0_28] : memref<112x128xf32, #tpu.memory_space<vmem>>, vector<1x128xf32>
    %52 = vector.extract_strided_slice %51 {offsets = [0, 0], sizes = [1, 8], strides = [1, 1]} : vector<1x128xf32> to vector<1x8xf32>
    %53 = tpu.concatenate %47, %52 in 0 : vector<1x8xf32>, vector<1x8xf32> -> vector<2x8xf32>
    %c0_29 = arith.constant 0 : index
    %c3 = arith.constant 3 : index
    %54 = memref.load %arg0[%c0_29, %c3] : memref<2x8xi32, #tpu.memory_space<smem>>
    %c0_i32_30 = arith.constant 0 : i32
    %55 = arith.addi %c0_i32_30, %54 : i32
    %56 = arith.index_cast %55 : i32 to index
    %c0_31 = arith.constant 0 : index
    %57 = vector.load %arg1[%56, %c0_31] : memref<112x128xf32, #tpu.memory_space<vmem>>, vector<1x128xf32>
    %58 = vector.extract_strided_slice %57 {offsets = [0, 0], sizes = [1, 8], strides = [1, 1]} : vector<1x128xf32> to vector<1x8xf32>
    %c1_32 = arith.constant 1 : index
    %c3_33 = arith.constant 3 : index
    %59 = memref.load %arg0[%c1_32, %c3_33] : memref<2x8xi32, #tpu.memory_space<smem>>
    %c0_i32_34 = arith.constant 0 : i32
    %60 = arith.addi %c0_i32_34, %59 : i32
    %61 = arith.index_cast %60 : i32 to index
    %c0_35 = arith.constant 0 : index
    %62 = vector.load %arg1[%61, %c0_35] : memref<112x128xf32, #tpu.memory_space<vmem>>, vector<1x128xf32>
    %63 = vector.extract_strided_slice %62 {offsets = [0, 0], sizes = [1, 8], strides = [1, 1]} : vector<1x128xf32> to vector<1x8xf32>
    %64 = tpu.concatenate %58, %63 in 0 : vector<1x8xf32>, vector<1x8xf32> -> vector<2x8xf32>
    %c0_36 = arith.constant 0 : index
    %c4 = arith.constant 4 : index
    %65 = memref.load %arg0[%c0_36, %c4] : memref<2x8xi32, #tpu.memory_space<smem>>
    %c0_i32_37 = arith.constant 0 : i32
    %66 = arith.addi %c0_i32_37, %65 : i32
    %67 = arith.index_cast %66 : i32 to index
    %c0_38 = arith.constant 0 : index
    %68 = vector.load %arg1[%67, %c0_38] : memref<112x128xf32, #tpu.memory_space<vmem>>, vector<1x128xf32>
    %69 = vector.extract_strided_slice %68 {offsets = [0, 0], sizes = [1, 8], strides = [1, 1]} : vector<1x128xf32> to vector<1x8xf32>
    %c1_39 = arith.constant 1 : index
    %c4_40 = arith.constant 4 : index
    %70 = memref.load %arg0[%c1_39, %c4_40] : memref<2x8xi32, #tpu.memory_space<smem>>
    %c0_i32_41 = arith.constant 0 : i32
    %71 = arith.addi %c0_i32_41, %70 : i32
    %72 = arith.index_cast %71 : i32 to index
    %c0_42 = arith.constant 0 : index
    %73 = vector.load %arg1[%72, %c0_42] : memref<112x128xf32, #tpu.memory_space<vmem>>, vector<1x128xf32>
    %74 = vector.extract_strided_slice %73 {offsets = [0, 0], sizes = [1, 8], strides = [1, 1]} : vector<1x128xf32> to vector<1x8xf32>
    %75 = tpu.concatenate %69, %74 in 0 : vector<1x8xf32>, vector<1x8xf32> -> vector<2x8xf32>
    %c0_43 = arith.constant 0 : index
    %c5 = arith.constant 5 : index
    %76 = memref.load %arg0[%c0_43, %c5] : memref<2x8xi32, #tpu.memory_space<smem>>
    %c0_i32_44 = arith.constant 0 : i32
    %77 = arith.addi %c0_i32_44, %76 : i32
    %78 = arith.index_cast %77 : i32 to index
    %c0_45 = arith.constant 0 : index
    %79 = vector.load %arg1[%78, %c0_45] : memref<112x128xf32, #tpu.memory_space<vmem>>, vector<1x128xf32>
    %80 = vector.extract_strided_slice %79 {offsets = [0, 0], sizes = [1, 8], strides = [1, 1]} : vector<1x128xf32> to vector<1x8xf32>
    %c1_46 = arith.constant 1 : index
    %c5_47 = arith.constant 5 : index
    %81 = memref.load %arg0[%c1_46, %c5_47] : memref<2x8xi32, #tpu.memory_space<smem>>
    %c0_i32_48 = arith.constant 0 : i32
    %82 = arith.addi %c0_i32_48, %81 : i32
    %83 = arith.index_cast %82 : i32 to index
    %c0_49 = arith.constant 0 : index
    %84 = vector.load %arg1[%83, %c0_49] : memref<112x128xf32, #tpu.memory_space<vmem>>, vector<1x128xf32>
    %85 = vector.extract_strided_slice %84 {offsets = [0, 0], sizes = [1, 8], strides = [1, 1]} : vector<1x128xf32> to vector<1x8xf32>
    %86 = tpu.concatenate %80, %85 in 0 : vector<1x8xf32>, vector<1x8xf32> -> vector<2x8xf32>
    %c0_50 = arith.constant 0 : index
    %c6 = arith.constant 6 : index
    %87 = memref.load %arg0[%c0_50, %c6] : memref<2x8xi32, #tpu.memory_space<smem>>
    %c0_i32_51 = arith.constant 0 : i32
    %88 = arith.addi %c0_i32_51, %87 : i32
    %89 = arith.index_cast %88 : i32 to index
    %c0_52 = arith.constant 0 : index
    %90 = vector.load %arg1[%89, %c0_52] : memref<112x128xf32, #tpu.memory_space<vmem>>, vector<1x128xf32>
    %91 = vector.extract_strided_slice %90 {offsets = [0, 0], sizes = [1, 8], strides = [1, 1]} : vector<1x128xf32> to vector<1x8xf32>
    %c1_53 = arith.constant 1 : index
    %c6_54 = arith.constant 6 : index
    %92 = memref.load %arg0[%c1_53, %c6_54] : memref<2x8xi32, #tpu.memory_space<smem>>
    %c0_i32_55 = arith.constant 0 : i32
    %93 = arith.addi %c0_i32_55, %92 : i32
    %94 = arith.index_cast %93 : i32 to index
    %c0_56 = arith.constant 0 : index
    %95 = vector.load %arg1[%94, %c0_56] : memref<112x128xf32, #tpu.memory_space<vmem>>, vector<1x128xf32>
    %96 = vector.extract_strided_slice %95 {offsets = [0, 0], sizes = [1, 8], strides = [1, 1]} : vector<1x128xf32> to vector<1x8xf32>
    %97 = tpu.concatenate %91, %96 in 0 : vector<1x8xf32>, vector<1x8xf32> -> vector<2x8xf32>
    %c0_57 = arith.constant 0 : index
    %c7 = arith.constant 7 : index
    %98 = memref.load %arg0[%c0_57, %c7] : memref<2x8xi32, #tpu.memory_space<smem>>
    %c0_i32_58 = arith.constant 0 : i32
    %99 = arith.addi %c0_i32_58, %98 : i32
    %100 = arith.index_cast %99 : i32 to index
    %c0_59 = arith.constant 0 : index
    %101 = vector.load %arg1[%100, %c0_59] : memref<112x128xf32, #tpu.memory_space<vmem>>, vector<1x128xf32>
    %102 = vector.extract_strided_slice %101 {offsets = [0, 0], sizes = [1, 8], strides = [1, 1]} : vector<1x128xf32> to vector<1x8xf32>
    %c1_60 = arith.constant 1 : index
    %c7_61 = arith.constant 7 : index
    %103 = memref.load %arg0[%c1_60, %c7_61] : memref<2x8xi32, #tpu.memory_space<smem>>
    %c0_i32_62 = arith.constant 0 : i32
    %104 = arith.addi %c0_i32_62, %103 : i32
    %105 = arith.index_cast %104 : i32 to index
    %c0_63 = arith.constant 0 : index
    %106 = vector.load %arg1[%105, %c0_63] : memref<112x128xf32, #tpu.memory_space<vmem>>, vector<1x128xf32>
    %107 = vector.extract_strided_slice %106 {offsets = [0, 0], sizes = [1, 8], strides = [1, 1]} : vector<1x128xf32> to vector<1x8xf32>
    %108 = tpu.concatenate %102, %107 in 0 : vector<1x8xf32>, vector<1x8xf32> -> vector<2x8xf32>
    %109 = math.tanh %31 : vector<2x8xf32>
    %110 = arith.truncf %109 : vector<2x8xf32> to vector<2x8xbf16>
    %cst = arith.constant dense<0.000000e+00> : vector<2x8xf32>
    %111 = tpu.matmul %110, %3, %cst {dimension_numbers = #tpu.dot_dimension_numbers<[1], [0], [0], [1], [0, 0, 1, 1], [], []>} : vector<2x8xbf16>, vector<8x8xbf16>, vector<2x8xf32> -> vector<2x8xf32>
    %112 = arith.addf %111, %14 : vector<2x8xf32>
    %113 = math.tanh %112 : vector<2x8xf32>
    %114 = arith.truncf %113 : vector<2x8xf32> to vector<2x8xbf16>
    %cst_64 = arith.constant dense<0.000000e+00> : vector<2x8xf32>
    %115 = tpu.matmul %114, %7, %cst_64 {dimension_numbers = #tpu.dot_dimension_numbers<[1], [0], [0], [1], [0, 0, 1, 1], [], []>} : vector<2x8xbf16>, vector<8x8xbf16>, vector<2x8xf32> -> vector<2x8xf32>
    %116 = arith.addf %115, %17 : vector<2x8xf32>
    %117 = math.tanh %116 : vector<2x8xf32>
    %118 = arith.truncf %117 : vector<2x8xf32> to vector<2x8xbf16>
    %cst_65 = arith.constant dense<0.000000e+00> : vector<2x8xf32>
    %119 = tpu.matmul %110, %1, %cst_65 {dimension_numbers = #tpu.dot_dimension_numbers<[1], [0], [0], [1], [0, 0, 1, 1], [], []>} : vector<2x8xbf16>, vector<8x8xbf16>, vector<2x8xf32> -> vector<2x8xf32>
    %cst_66 = arith.constant dense<0.000000e+00> : vector<2x8xf32>
    %120 = tpu.matmul %114, %5, %cst_66 {dimension_numbers = #tpu.dot_dimension_numbers<[1], [0], [0], [1], [0, 0, 1, 1], [], []>} : vector<2x8xbf16>, vector<8x8xbf16>, vector<2x8xf32> -> vector<2x8xf32>
    %cst_67 = arith.constant dense<0.000000e+00> : vector<2x8xf32>
    %121 = tpu.matmul %118, %9, %cst_67 {dimension_numbers = #tpu.dot_dimension_numbers<[1], [0], [0], [1], [0, 0, 1, 1], [], []>} : vector<2x8xbf16>, vector<8x8xbf16>, vector<2x8xf32> -> vector<2x8xf32>
    %122 = arith.addf %42, %119 : vector<2x8xf32>
    %123 = math.tanh %122 : vector<2x8xf32>
    %124 = arith.truncf %123 : vector<2x8xf32> to vector<2x8xbf16>
    %cst_68 = arith.constant dense<0.000000e+00> : vector<2x8xf32>
    %125 = tpu.matmul %124, %3, %cst_68 {dimension_numbers = #tpu.dot_dimension_numbers<[1], [0], [0], [1], [0, 0, 1, 1], [], []>} : vector<2x8xbf16>, vector<8x8xbf16>, vector<2x8xf32> -> vector<2x8xf32>
    %126 = arith.addf %125, %120 : vector<2x8xf32>
    %127 = arith.addf %126, %14 : vector<2x8xf32>
    %128 = math.tanh %127 : vector<2x8xf32>
    %129 = arith.truncf %128 : vector<2x8xf32> to vector<2x8xbf16>
    %cst_69 = arith.constant dense<0.000000e+00> : vector<2x8xf32>
    %130 = tpu.matmul %129, %7, %cst_69 {dimension_numbers = #tpu.dot_dimension_numbers<[1], [0], [0], [1], [0, 0, 1, 1], [], []>} : vector<2x8xbf16>, vector<8x8xbf16>, vector<2x8xf32> -> vector<2x8xf32>
    %131 = arith.addf %130, %121 : vector<2x8xf32>
    %132 = arith.addf %131, %17 : vector<2x8xf32>
    %133 = math.tanh %132 : vector<2x8xf32>
    %134 = arith.truncf %133 : vector<2x8xf32> to vector<2x8xbf16>
    %cst_70 = arith.constant dense<0.000000e+00> : vector<2x8xf32>
    %135 = tpu.matmul %124, %1, %cst_70 {dimension_numbers = #tpu.dot_dimension_numbers<[1], [0], [0], [1], [0, 0, 1, 1], [], []>} : vector<2x8xbf16>, vector<8x8xbf16>, vector<2x8xf32> -> vector<2x8xf32>
    %cst_71 = arith.constant dense<0.000000e+00> : vector<2x8xf32>
    %136 = tpu.matmul %129, %5, %cst_71 {dimension_numbers = #tpu.dot_dimension_numbers<[1], [0], [0], [1], [0, 0, 1, 1], [], []>} : vector<2x8xbf16>, vector<8x8xbf16>, vector<2x8xf32> -> vector<2x8xf32>
    %cst_72 = arith.constant dense<0.000000e+00> : vector<2x8xf32>
    %137 = tpu.matmul %134, %9, %cst_72 {dimension_numbers = #tpu.dot_dimension_numbers<[1], [0], [0], [1], [0, 0, 1, 1], [], []>} : vector<2x8xbf16>, vector<8x8xbf16>, vector<2x8xf32> -> vector<2x8xf32>
    %138 = arith.addf %53, %135 : vector<2x8xf32>
    %139 = math.tanh %138 : vector<2x8xf32>
    %140 = arith.truncf %139 : vector<2x8xf32> to vector<2x8xbf16>
    %cst_73 = arith.constant dense<0.000000e+00> : vector<2x8xf32>
    %141 = tpu.matmul %140, %3, %cst_73 {dimension_numbers = #tpu.dot_dimension_numbers<[1], [0], [0], [1], [0, 0, 1, 1], [], []>} : vector<2x8xbf16>, vector<8x8xbf16>, vector<2x8xf32> -> vector<2x8xf32>
    %142 = arith.addf %141, %136 : vector<2x8xf32>
    %143 = arith.addf %142, %14 : vector<2x8xf32>
    %144 = math.tanh %143 : vector<2x8xf32>
    %145 = arith.truncf %144 : vector<2x8xf32> to vector<2x8xbf16>
    %cst_74 = arith.constant dense<0.000000e+00> : vector<2x8xf32>
    %146 = tpu.matmul %145, %7, %cst_74 {dimension_numbers = #tpu.dot_dimension_numbers<[1], [0], [0], [1], [0, 0, 1, 1], [], []>} : vector<2x8xbf16>, vector<8x8xbf16>, vector<2x8xf32> -> vector<2x8xf32>
    %147 = arith.addf %146, %137 : vector<2x8xf32>
    %148 = arith.addf %147, %17 : vector<2x8xf32>
    %149 = math.tanh %148 : vector<2x8xf32>
    %150 = arith.truncf %149 : vector<2x8xf32> to vector<2x8xbf16>
    %cst_75 = arith.constant dense<0.000000e+00> : vector<2x8xf32>
    %151 = tpu.matmul %140, %1, %cst_75 {dimension_numbers = #tpu.dot_dimension_numbers<[1], [0], [0], [1], [0, 0, 1, 1], [], []>} : vector<2x8xbf16>, vector<8x8xbf16>, vector<2x8xf32> -> vector<2x8xf32>
    %cst_76 = arith.constant dense<0.000000e+00> : vector<2x8xf32>
    %152 = tpu.matmul %145, %5, %cst_76 {dimension_numbers = #tpu.dot_dimension_numbers<[1], [0], [0], [1], [0, 0, 1, 1], [], []>} : vector<2x8xbf16>, vector<8x8xbf16>, vector<2x8xf32> -> vector<2x8xf32>
    %cst_77 = arith.constant dense<0.000000e+00> : vector<2x8xf32>
    %153 = tpu.matmul %150, %9, %cst_77 {dimension_numbers = #tpu.dot_dimension_numbers<[1], [0], [0], [1], [0, 0, 1, 1], [], []>} : vector<2x8xbf16>, vector<8x8xbf16>, vector<2x8xf32> -> vector<2x8xf32>
    %154 = arith.addf %64, %151 : vector<2x8xf32>
    %155 = math.tanh %154 : vector<2x8xf32>
    %156 = arith.truncf %155 : vector<2x8xf32> to vector<2x8xbf16>
    %cst_78 = arith.constant dense<0.000000e+00> : vector<2x8xf32>
    %157 = tpu.matmul %156, %3, %cst_78 {dimension_numbers = #tpu.dot_dimension_numbers<[1], [0], [0], [1], [0, 0, 1, 1], [], []>} : vector<2x8xbf16>, vector<8x8xbf16>, vector<2x8xf32> -> vector<2x8xf32>
    %158 = arith.addf %157, %152 : vector<2x8xf32>
    %159 = arith.addf %158, %14 : vector<2x8xf32>
    %160 = math.tanh %159 : vector<2x8xf32>
    %161 = arith.truncf %160 : vector<2x8xf32> to vector<2x8xbf16>
    %cst_79 = arith.constant dense<0.000000e+00> : vector<2x8xf32>
    %162 = tpu.matmul %161, %7, %cst_79 {dimension_numbers = #tpu.dot_dimension_numbers<[1], [0], [0], [1], [0, 0, 1, 1], [], []>} : vector<2x8xbf16>, vector<8x8xbf16>, vector<2x8xf32> -> vector<2x8xf32>
    %163 = arith.addf %162, %153 : vector<2x8xf32>
    %164 = arith.addf %163, %17 : vector<2x8xf32>
    %165 = math.tanh %164 : vector<2x8xf32>
    %166 = arith.truncf %165 : vector<2x8xf32> to vector<2x8xbf16>
    %cst_80 = arith.constant dense<0.000000e+00> : vector<2x8xf32>
    %167 = tpu.matmul %156, %1, %cst_80 {dimension_numbers = #tpu.dot_dimension_numbers<[1], [0], [0], [1], [0, 0, 1, 1], [], []>} : vector<2x8xbf16>, vector<8x8xbf16>, vector<2x8xf32> -> vector<2x8xf32>
    %cst_81 = arith.constant dense<0.000000e+00> : vector<2x8xf32>
    %168 = tpu.matmul %161, %5, %cst_81 {dimension_numbers = #tpu.dot_dimension_numbers<[1], [0], [0], [1], [0, 0, 1, 1], [], []>} : vector<2x8xbf16>, vector<8x8xbf16>, vector<2x8xf32> -> vector<2x8xf32>
    %cst_82 = arith.constant dense<0.000000e+00> : vector<2x8xf32>
    %169 = tpu.matmul %166, %9, %cst_82 {dimension_numbers = #tpu.dot_dimension_numbers<[1], [0], [0], [1], [0, 0, 1, 1], [], []>} : vector<2x8xbf16>, vector<8x8xbf16>, vector<2x8xf32> -> vector<2x8xf32>
    %170 = arith.addf %75, %167 : vector<2x8xf32>
    %171 = math.tanh %170 : vector<2x8xf32>
    %172 = arith.truncf %171 : vector<2x8xf32> to vector<2x8xbf16>
    %cst_83 = arith.constant dense<0.000000e+00> : vector<2x8xf32>
    %173 = tpu.matmul %172, %3, %cst_83 {dimension_numbers = #tpu.dot_dimension_numbers<[1], [0], [0], [1], [0, 0, 1, 1], [], []>} : vector<2x8xbf16>, vector<8x8xbf16>, vector<2x8xf32> -> vector<2x8xf32>
    %174 = arith.addf %173, %168 : vector<2x8xf32>
    %175 = arith.addf %174, %14 : vector<2x8xf32>
    %176 = math.tanh %175 : vector<2x8xf32>
    %177 = arith.truncf %176 : vector<2x8xf32> to vector<2x8xbf16>
    %cst_84 = arith.constant dense<0.000000e+00> : vector<2x8xf32>
    %178 = tpu.matmul %177, %7, %cst_84 {dimension_numbers = #tpu.dot_dimension_numbers<[1], [0], [0], [1], [0, 0, 1, 1], [], []>} : vector<2x8xbf16>, vector<8x8xbf16>, vector<2x8xf32> -> vector<2x8xf32>
    %179 = arith.addf %178, %169 : vector<2x8xf32>
    %180 = arith.addf %179, %17 : vector<2x8xf32>
    %181 = math.tanh %180 : vector<2x8xf32>
    %182 = arith.truncf %181 : vector<2x8xf32> to vector<2x8xbf16>
    %cst_85 = arith.constant dense<0.000000e+00> : vector<2x8xf32>
    %183 = tpu.matmul %172, %1, %cst_85 {dimension_numbers = #tpu.dot_dimension_numbers<[1], [0], [0], [1], [0, 0, 1, 1], [], []>} : vector<2x8xbf16>, vector<8x8xbf16>, vector<2x8xf32> -> vector<2x8xf32>
    %cst_86 = arith.constant dense<0.000000e+00> : vector<2x8xf32>
    %184 = tpu.matmul %177, %5, %cst_86 {dimension_numbers = #tpu.dot_dimension_numbers<[1], [0], [0], [1], [0, 0, 1, 1], [], []>} : vector<2x8xbf16>, vector<8x8xbf16>, vector<2x8xf32> -> vector<2x8xf32>
    %cst_87 = arith.constant dense<0.000000e+00> : vector<2x8xf32>
    %185 = tpu.matmul %182, %9, %cst_87 {dimension_numbers = #tpu.dot_dimension_numbers<[1], [0], [0], [1], [0, 0, 1, 1], [], []>} : vector<2x8xbf16>, vector<8x8xbf16>, vector<2x8xf32> -> vector<2x8xf32>
    %186 = arith.addf %86, %183 : vector<2x8xf32>
    %187 = math.tanh %186 : vector<2x8xf32>
    %188 = arith.truncf %187 : vector<2x8xf32> to vector<2x8xbf16>
    %cst_88 = arith.constant dense<0.000000e+00> : vector<2x8xf32>
    %189 = tpu.matmul %188, %3, %cst_88 {dimension_numbers = #tpu.dot_dimension_numbers<[1], [0], [0], [1], [0, 0, 1, 1], [], []>} : vector<2x8xbf16>, vector<8x8xbf16>, vector<2x8xf32> -> vector<2x8xf32>
    %190 = arith.addf %189, %184 : vector<2x8xf32>
    %191 = arith.addf %190, %14 : vector<2x8xf32>
    %192 = math.tanh %191 : vector<2x8xf32>
    %193 = arith.truncf %192 : vector<2x8xf32> to vector<2x8xbf16>
    %cst_89 = arith.constant dense<0.000000e+00> : vector<2x8xf32>
    %194 = tpu.matmul %193, %7, %cst_89 {dimension_numbers = #tpu.dot_dimension_numbers<[1], [0], [0], [1], [0, 0, 1, 1], [], []>} : vector<2x8xbf16>, vector<8x8xbf16>, vector<2x8xf32> -> vector<2x8xf32>
    %195 = arith.addf %194, %185 : vector<2x8xf32>
    %196 = arith.addf %195, %17 : vector<2x8xf32>
    %197 = math.tanh %196 : vector<2x8xf32>
    %198 = arith.truncf %197 : vector<2x8xf32> to vector<2x8xbf16>
    %cst_90 = arith.constant dense<0.000000e+00> : vector<2x8xf32>
    %199 = tpu.matmul %188, %1, %cst_90 {dimension_numbers = #tpu.dot_dimension_numbers<[1], [0], [0], [1], [0, 0, 1, 1], [], []>} : vector<2x8xbf16>, vector<8x8xbf16>, vector<2x8xf32> -> vector<2x8xf32>
    %cst_91 = arith.constant dense<0.000000e+00> : vector<2x8xf32>
    %200 = tpu.matmul %193, %5, %cst_91 {dimension_numbers = #tpu.dot_dimension_numbers<[1], [0], [0], [1], [0, 0, 1, 1], [], []>} : vector<2x8xbf16>, vector<8x8xbf16>, vector<2x8xf32> -> vector<2x8xf32>
    %cst_92 = arith.constant dense<0.000000e+00> : vector<2x8xf32>
    %201 = tpu.matmul %198, %9, %cst_92 {dimension_numbers = #tpu.dot_dimension_numbers<[1], [0], [0], [1], [0, 0, 1, 1], [], []>} : vector<2x8xbf16>, vector<8x8xbf16>, vector<2x8xf32> -> vector<2x8xf32>
    %202 = arith.addf %97, %199 : vector<2x8xf32>
    %203 = math.tanh %202 : vector<2x8xf32>
    %204 = arith.truncf %203 : vector<2x8xf32> to vector<2x8xbf16>
    %cst_93 = arith.constant dense<0.000000e+00> : vector<2x8xf32>
    %205 = tpu.matmul %204, %3, %cst_93 {dimension_numbers = #tpu.dot_dimension_numbers<[1], [0], [0], [1], [0, 0, 1, 1], [], []>} : vector<2x8xbf16>, vector<8x8xbf16>, vector<2x8xf32> -> vector<2x8xf32>
    %206 = arith.addf %205, %200 : vector<2x8xf32>
    %207 = arith.addf %206, %14 : vector<2x8xf32>
    %208 = math.tanh %207 : vector<2x8xf32>
    %209 = arith.truncf %208 : vector<2x8xf32> to vector<2x8xbf16>
    %cst_94 = arith.constant dense<0.000000e+00> : vector<2x8xf32>
    %210 = tpu.matmul %209, %7, %cst_94 {dimension_numbers = #tpu.dot_dimension_numbers<[1], [0], [0], [1], [0, 0, 1, 1], [], []>} : vector<2x8xbf16>, vector<8x8xbf16>, vector<2x8xf32> -> vector<2x8xf32>
    %211 = arith.addf %210, %201 : vector<2x8xf32>
    %212 = arith.addf %211, %17 : vector<2x8xf32>
    %213 = math.tanh %212 : vector<2x8xf32>
    %214 = arith.truncf %213 : vector<2x8xf32> to vector<2x8xbf16>
    %cst_95 = arith.constant dense<0.000000e+00> : vector<2x8xf32>
    %215 = tpu.matmul %204, %1, %cst_95 {dimension_numbers = #tpu.dot_dimension_numbers<[1], [0], [0], [1], [0, 0, 1, 1], [], []>} : vector<2x8xbf16>, vector<8x8xbf16>, vector<2x8xf32> -> vector<2x8xf32>
    %cst_96 = arith.constant dense<0.000000e+00> : vector<2x8xf32>
    %216 = tpu.matmul %209, %5, %cst_96 {dimension_numbers = #tpu.dot_dimension_numbers<[1], [0], [0], [1], [0, 0, 1, 1], [], []>} : vector<2x8xbf16>, vector<8x8xbf16>, vector<2x8xf32> -> vector<2x8xf32>
    %cst_97 = arith.constant dense<0.000000e+00> : vector<2x8xf32>
    %217 = tpu.matmul %214, %9, %cst_97 {dimension_numbers = #tpu.dot_dimension_numbers<[1], [0], [0], [1], [0, 0, 1, 1], [], []>} : vector<2x8xbf16>, vector<8x8xbf16>, vector<2x8xf32> -> vector<2x8xf32>
    %218 = arith.addf %108, %215 : vector<2x8xf32>
    %219 = math.tanh %218 : vector<2x8xf32>
    %220 = arith.truncf %219 : vector<2x8xf32> to vector<2x8xbf16>
    %cst_98 = arith.constant dense<0.000000e+00> : vector<2x8xf32>
    %221 = tpu.matmul %220, %3, %cst_98 {dimension_numbers = #tpu.dot_dimension_numbers<[1], [0], [0], [1], [0, 0, 1, 1], [], []>} : vector<2x8xbf16>, vector<8x8xbf16>, vector<2x8xf32> -> vector<2x8xf32>
    %222 = arith.addf %221, %216 : vector<2x8xf32>
    %223 = arith.addf %222, %14 : vector<2x8xf32>
    %224 = math.tanh %223 : vector<2x8xf32>
    %225 = arith.truncf %224 : vector<2x8xf32> to vector<2x8xbf16>
    %cst_99 = arith.constant dense<0.000000e+00> : vector<2x8xf32>
    %226 = tpu.matmul %225, %7, %cst_99 {dimension_numbers = #tpu.dot_dimension_numbers<[1], [0], [0], [1], [0, 0, 1, 1], [], []>} : vector<2x8xbf16>, vector<8x8xbf16>, vector<2x8xf32> -> vector<2x8xf32>
    %227 = arith.addf %226, %217 : vector<2x8xf32>
    %228 = arith.addf %227, %17 : vector<2x8xf32>
    %229 = math.tanh %228 : vector<2x8xf32>
    %230 = arith.truncf %229 : vector<2x8xf32> to vector<2x8xbf16>
    %cst_100 = arith.constant dense<0.000000e+00> : vector<2x4xf32>
    %231 = tpu.matmul %230, %11, %cst_100 {dimension_numbers = #tpu.dot_dimension_numbers<[1], [0], [0], [1], [0, 0, 1, 1], [], []>} : vector<2x8xbf16>, vector<8x4xbf16>, vector<2x4xf32> -> vector<2x4xf32>
    %232 = arith.addf %231, %20 : vector<2x4xf32>
    %c0_101 = arith.constant 0 : index
    %c0_102 = arith.constant 0 : index
    %233 = vector.load %arg2[%c0_101, %c0_102] : memref<2x4xf32, #tpu.memory_space<vmem>>, vector<2x4xf32>
    tpu.vector_store %arg2[%c0_101, %c0_102], %232 {strides = array<i32>} : memref<2x4xf32, #tpu.memory_space<vmem>>, vector<2x4xf32>,
    return
  }
}

</mosaic_0001>

<bundles_post_ra>
// kernel: tpu_custom_call.1
= control target key start
LH: loop header
LB: loop body
LE: loop exit
PB: predicated region body
PF: predicated region fallthrough
CT: control target
= control target key end

     0   :  { %7 = vsyncpa [#allocation5], 0  ;;  %s2627_s0 = inlined_call_operand.hbm [shape: s32[2,8], index: 0, kind: input, shape index: {}]   ;;  %s2628_s1 = inlined_call_operand.hbm [shape: f32[112,128], index: 1, kind: input, shape index: {}]   ;;  %s2629_s2 = inlined_call_operand.hbm [shape: f32[2,4], index: 2, kind: output, shape index: {}]  }
   0x1   :  { %8 = vsyncpa [#allocation3], 0 }
   0x2   :  { %9 = vsyncpa [#allocation4], 0  ;;  %s2276_s11 = scalar_lea.hbm %s2627_s0, 32 }
   0x3   :  { %p2277_p0 = scmp.ne.s32.totalorder %s2627_s0, %s2276_s11  ;;  %p2280_p1 = scmp.lt.u32.totalorder %s2276_s11, %s2627_s0 }
   0x5   :  { %p2282_p2 = pnand %p2280_p1, %p2277_p0 }
   0x7   :  { %2285 = shalt.err (!%p2282_p2)
}
   0x8   :  { %s2336_s16 = smov [#allocation2]   ;;  %s2337_s19 = smov [#allocation6]  }
   0x9   :  { %17 = dma.hbm_to_smem %s2627_s0, 32, %s2336_s16, [#allocation5]  }
   0xa   :  { %s23_s20 = sshll.u32 %s2337_s19, 4  ;;  %s2286_s23 = scalar_lea.hbm %s2628_s1, 1792  ;;  %s24_s20 = int_to_ptr.vmem [resolvable:$true] %s23_s20 }
   0xb   :  { %p2287_p3 = scmp.ne.s32.totalorder %s2628_s1, %s2286_s23  ;;  %p2290_p4 = scmp.lt.u32.totalorder %s2286_s23, %s2628_s1 }
   0xd   :  { %p2292_p5 = pnand %p2290_p4, %p2287_p3 }
   0xf   :  { %2295 = shalt.err (!%p2292_p5)
}
  0x10   :  { %s2296_s28 = scalar_lea.vmem %s24_s20, 1792  ;;  %p2301_p7 = scmp.lt.s32.totalorder %s24_s20, %s24_s20 }
  0x11   :  { %p2297_p6 = scmp.ne.s32.totalorder %s24_s20, %s2296_s28  ;;  %p2302_p8 = scmp.lt.s32.totalorder %s2296_s28, %s2296_s28 }
  0x13   :  { %p2303_p9 = por %p2302_p8, %p2301_p7 }
  0x15   :  { %p2304_p10 = pnand %p2303_p9, %p2297_p6 }
  0x17   :  { %2307 = shalt.err (!%p2304_p10)
}
  0x18   :  { %s2338_s0 = smov 128   ;;  %s2339_s29 = smov 8  }
  0x19   :  { %29 = dma.hbm_to_vmem [thread:$0]  %s2628_s1, 1792, %s24_s20, [#allocation3], %s2338_s0, %s2338_s0, %s2339_s29  }
  0x1a   :  { %2330 = dma.done.wait [#allocation5], 32  }
  0x1b   :  { %2331 = vsyncadd [#allocation5], 4294967264 }
  0x1c   :  { %2332 = dma.done.wait [#allocation3], 1792  }
  0x1d   :  { %2333 = vsyncadd [#allocation3], 4294965504 }
  0x1e   :  { %36 = sfence }
  0x1f   :  { %v40_v0 = vld [vmem:[#allocation6 + $0x40] sm:$0xff]  ;;  %vm152_vm0 = vcmask 1043456   ;;  %s65_s4 = sld [smem:[#allocation2]]  ;;  %v2340_v1 = vmov 0.0   ;;  %vm2341_vm1 = vmmov 0   ;;  %vm74_vm2 = vcmask 1040384  }
  0x20   :  { %1993 = vmatprep.subr.bf16.mxu0 %v2340_v1  ;;  %v41_v2 = vpack.c.bf16 %v40_v0, %v40_v0  ;;  %1995 = vmatprep.mubr.msk.bf16.mxu0 %vm2341_vm1, %v2340_v1  ;;  %s1864_s5 = sld [smem:[#allocation2 + $0x80]]  ;;  %v38_v8 = vld [vmem:[#allocation6 + $0x38] sm:$0xff]  ;;  %vm148_vm3 = vcmask 64512   ;;  %v44_v13 = vld [vmem:[#allocation6 + $0x50] sm:$0xff]  ;;  %s1866_s7 = sld [smem:[#allocation2 + $0x81]]  ;;  %v42_v25 = vld [vmem:[#allocation6 + $0x48] sm:$0xff] }
  0x21   :  { %1999 = vmatprep.subr.bf16.mxu1 %v2340_v1  ;;  %2001 = vmatprep.mubr.msk.bf16.mxu1 %vm2341_vm1, %v2340_v1  ;;  %v39_v9 = vpack.c.bf16 %v38_v8, %v38_v8  ;;  %v45_v14 = vpack.c.bf16 %v44_v13, %v44_v13  ;;  %s1865_s8 = sld [smem:[#allocation2 + $0x1]]  ;;  %v2410_v16 = vld [vmem:[#allocation6 + $0x68] ss:$0 sm:$0xff]  ;;  %v43_v30 = vpack.c.bf16 %v42_v25, %v42_v25  ;;  %v46_v38 = vld [vmem:[#allocation6 + $0x58] sm:$0xff]  ;;  %v2442_v41 = vld [vmem:[#allocation6 + $0x69] ss:$0 sm:$0xff] }
  0x22   :  { %v2389_v3 = vsel %vm152_vm0, %v41_v2, 0  ;;  %v47_v39 = vpack.c.bf16 %v46_v38, %v46_v38  ;;  %s1868_s11 = sld [smem:[#allocation2 + $0x82]]  ;;  %s1870_s15 = sld [smem:[#allocation2 + $0x83]]  ;;  %vm1827_vm4 = vcmask 25600  }
  0x23   :  { %1994 = vmatpush3.bf16.msra.mxu0 %v2389_v3  ;;  %v2395_v12 = vsel %vm152_vm0, %v39_v9, 0  ;;  %v2406_v15 = vsel %vm152_vm0, %v45_v14, 0  ;;  %v2415_v35 = vsel %vm152_vm0, %v43_v30, 0  ;;  %s1867_s12 = sld [smem:[#allocation2 + $0x2]]  ;;  %s1869_s16 = sld [smem:[#allocation2 + $0x3]] }
  0x24   :  { %2005 = vmatprep.subr.bf16.mxu0 %v2340_v1  ;;  %2000 = vmatpush3.bf16.msra.mxu1 %v2406_v15  ;;  %v2436_v40 = vsel %vm152_vm0, %v47_v39, 0  ;;  %s1872_s19 = sld [smem:[#allocation2 + $0x84]]  ;;  %s1874_s23 = sld [smem:[#allocation2 + $0x85]] }
  0x25   :  { %s66_s1 = scalar_lea.vmem [#allocation6], %s65_s4  ;;  %2011 = vmatprep.subr.bf16.mxu1 %v2340_v1  ;;  %s1871_s20 = sld [smem:[#allocation2 + $0x4]] }
  0x26   :  { %v67_v4 = vld [vmem:[%s66_s1] sm:$0x1]  ;;  %s69_s6 = scalar_lea.vmem [#allocation6], %s1864_s5  ;;  %s80_s9 = scalar_lea.vmem [#allocation6], %s1866_s7 }
  0x27   :  { %v70_v5 = vld [vmem:[%s69_s6] sm:$0x1]  ;;  %s77_s10 = scalar_lea.vmem [#allocation6], %s1865_s8  ;;  %s1873_s24 = sld [smem:[#allocation2 + $0x5]] }
  0x28   :  { %v72_v6 = vrot.slane %v70_v5, 7  ;;  %v81_v20 = vld [vmem:[%s80_s9] sm:$0x1]  ;;  %s90_s13 = scalar_lea.vmem [#allocation6], %s1868_s11  ;;  %s100_s17 = scalar_lea.vmem [#allocation6], %s1870_s15 }
  0x29   :  { %v83_v23 = vrot.slane %v81_v20, 7  ;;  %v78_v24 = vld [vmem:[%s77_s10] sm:$0x1]  ;;  %s87_s14 = scalar_lea.vmem [#allocation6], %s1867_s12  ;;  %s97_s18 = scalar_lea.vmem [#allocation6], %s1869_s16 }
  0x2a   :  { %v75_v7 = vsel %vm74_vm2, %v67_v4, %v72_v6  ;;  %v91_v59 = vld [vmem:[%s90_s13] sm:$0x1]  ;;  %s110_s21 = scalar_lea.vmem [#allocation6], %s1872_s19  ;;  %s120_s25 = scalar_lea.vmem [#allocation6], %s1874_s23 }
  0x2b   :  { %2228 = vtanh.f32 %v75_v7  ;;  %v85_v26 = vsel %vm74_vm2, %v78_v24, %v83_v23  ;;  %v93_v60 = vrot.slane %v91_v59, 7  ;;  %v88_v62 = vld [vmem:[%s87_s14] sm:$0x1]  ;;  %s107_s22 = scalar_lea.vmem [#allocation6], %s1871_s20  ;;  %s1876_s27 = sld [smem:[#allocation2 + $0x86]] }
  0x2c   :  { %v98_v39 = vld [vmem:[%s97_s18] sm:$0x1]  ;;  %s1875_s28 = sld [smem:[#allocation2 + $0x6]]  ;;  %s1878_s30 = sld [smem:[#allocation2 + $0x87]] }
  0x2d   :  { %v95_v4 = vsel %vm74_vm2, %v88_v62, %v93_v60  ;;  %s117_s26 = scalar_lea.vmem [#allocation6], %s1873_s24  ;;  %s1877_s3 = sld [smem:[#allocation2 + $0x7]] }
  0x2e   :  { %s2342_s1 = smov [#allocation7]  }
  0x2f   :  { %s1835_s6 = sshll.u32 %s2342_s1, 4  ;;  %s1836_s6 = int_to_ptr.vmem [resolvable:$true] %s1835_s6 }
  0x30   :  { %s2308_s7 = scalar_lea.vmem %s1836_s6, 32  ;;  %p2313_p12 = scmp.lt.s32.totalorder %s1836_s6, %s1836_s6 }
  0x31   :  { %s130_s0 = scalar_lea.vmem [#allocation6], %s1876_s27  ;;  %p2309_p11 = scmp.ne.s32.totalorder %s1836_s6, %s2308_s7 }
  0x32   :  { %s127_s29 = scalar_lea.vmem [#allocation6], %s1875_s28  ;;  %s140_s4 = scalar_lea.vmem [#allocation6], %s1878_s30 }
  0x33   :  { %s137_s5 = scalar_lea.vmem [#allocation6], %s1877_s3  ;;  %p2314_p13 = scmp.lt.s32.totalorder %s2308_s7, %s2308_s7 }
  0x35   :  { %v2229_v10 = vpop.eup %2228  ;;  %p2315_p0 = por %p2314_p13, %p2313_p12 }
  0x36   :  { %v147_v11 = vpack.c.bf16 %v2229_v10, %v2229_v10 }
  0x37   :  { %p2316_p1 = pnand %p2315_p0, %p2309_p11 }
  0x38   :  { %1996 = vmatmul.mubr.msk.bf16.vlgmr.msra.gmra.mrb[0].mxu0 %vm148_vm3, %v147_v11 }
  0x39   :  { %2006 = vmatpush3.bf16.msra.mxu0 %v2395_v12  ;;  %2007 = vmatprep.mubr.msk.bf16.mxu0 %vm2341_vm1, %v2340_v1 }
  0x3a   :  { %2017 = vmatprep.subr.bf16.mxu0 %v2340_v1 }
  0x40   :  { %2008 = vmatmul.mubr.msk.bf16.vlgmr.msra.gmra.mrb[4].mxu0 %vm148_vm3, %v147_v11 }
  0x41   :  { %2019 = vmatprep.mubr.msk.bf16.mxu0 %vm2341_vm1, %v2340_v1  ;;  %2018 = vmatpush3.bf16.msra.mxu0 %v2436_v40 }
  0x42   :  { %2029 = vmatprep.subr.bf16.mxu0 %v2340_v1 }
 0x10b   :  { %v190_v17 = vpop.f32.mrb[0].mxu0 }
 0x10c   :  { %v191_v18 = vadd.f32 %v2410_v16, %v190_v17  ;;  %v1997_v19 = vpop.f32.mrb[1].mxu0 }
 0x10d   :  { %v193_v21 = vpop.f32.mrb[2].mxu0 }
 0x10e   :  { %2230 = vtanh.f32 %v191_v18  ;;  %v1998_v22 = vpop.f32.mrb[3].mxu0 }
 0x113   :  { %v283_v27 = vpop.f32.mrb[4].mxu0 }
 0x114   :  { %v2009_v28 = vpop.f32.mrb[5].mxu0  ;;  %v378_v31 = vadd.f32 %v283_v27, %v85_v26 }
 0x115   :  { %v286_v29 = vpop.f32.mrb[6].mxu0 }
 0x116   :  { %v2010_v32 = vpop.f32.mrb[7].mxu0  ;;  %2232 = vtanh.f32 %v378_v31 }
 0x118   :  { %v2231_v33 = vpop.eup %2230 }
 0x119   :  { %v197_v34 = vpack.c.bf16 %v2231_v33, %v2231_v33 }
 0x11b   :  { %2002 = vmatmul.mubr.msk.bf16.vlgmr.msra.gmra.mrb[0].mxu1 %vm148_vm3, %v197_v34 }
 0x11c   :  { %2012 = vmatpush3.bf16.msra.mxu1 %v2415_v35  ;;  %2013 = vmatprep.mubr.msk.bf16.mxu1 %vm2341_vm1, %v2340_v1 }
 0x11d   :  { %2023 = vmatprep.subr.bf16.mxu1 %v2340_v1 }
 0x120   :  { %v2233_v36 = vpop.eup %2232 }
 0x121   :  { %v380_v37 = vpack.c.bf16 %v2233_v36, %v2233_v36  ;;  %v101_v36 = vld [vmem:[%s100_s17] sm:$0x1] }
 0x123   :  { %2014 = vmatmul.mubr.msk.bf16.vlgmr.msra.gmra.mrb[4].mxu1 %vm148_vm3, %v197_v34 }
 0x124   :  { %2024 = vmatpush3.bf16.msra.mxu1 %v2389_v3  ;;  %2025 = vmatprep.mubr.msk.bf16.mxu1 %vm2341_vm1, %v2340_v1 }
 0x125   :  { %2035 = vmatprep.subr.bf16.mxu1 %v2340_v1 }
 0x12b   :  { %2026 = vmatmul.mubr.msk.bf16.vlgmr.msra.gmra.mrb[8].mxu1 %vm148_vm3, %v380_v37 }
 0x12c   :  { %2036 = vmatpush3.bf16.msra.mxu1 %v2395_v12  ;;  %2037 = vmatprep.mubr.msk.bf16.mxu1 %vm2341_vm1, %v2340_v1 }
 0x12d   :  { %2047 = vmatprep.subr.bf16.mxu1 %v2340_v1 }
 0x133   :  { %2038 = vmatmul.mubr.msk.bf16.vlgmr.msra.gmra.mrb[12].mxu1 %vm148_vm3, %v380_v37  ;;  %v103_v37 = vrot.slane %v101_v36, 7 }
 0x134   :  { %2049 = vmatprep.mubr.msk.bf16.mxu1 %vm2341_vm1, %v2340_v1  ;;  %2048 = vmatpush3.bf16.msra.mxu1 %v2436_v40 }
 0x135   :  { %2059 = vmatprep.subr.bf16.mxu1 %v2340_v1 }
 0x1ee   :  { %v238_v42 = vpop.f32.mrb[0].mxu1 }
 0x1ef   :  { %v239_v43 = vadd.f32 %v2442_v41, %v238_v42  ;;  %v2003_v44 = vpop.f32.mrb[1].mxu1 }
 0x1f0   :  { %v241_v45 = vpop.f32.mrb[2].mxu1 }
 0x1f1   :  { %2234 = vtanh.f32 %v239_v43  ;;  %v2004_v46 = vpop.f32.mrb[3].mxu1  ;;  %v105_v45 = vsel %vm74_vm2, %v98_v39, %v103_v37 }
 0x1f6   :  { %v326_v47 = vpop.f32.mrb[4].mxu1 }
 0x1f7   :  { %v2015_v48 = vpop.f32.mrb[5].mxu1 }
 0x1f8   :  { %v329_v49 = vpop.f32.mrb[6].mxu1 }
 0x1f9   :  { %v2016_v50 = vpop.f32.mrb[7].mxu1 }
 0x1fb   :  { %v2235_v51 = vpop.eup %2234 }
 0x1fc   :  { %v245_v52 = vpack.c.bf16 %v2235_v51, %v2235_v51 }
 0x1fe   :  { %2020 = vmatmul.mubr.msk.bf16.vlgmr.msra.gmra.mrb[8].mxu0 %vm148_vm3, %v245_v52  ;;  %v418_v53 = vpop.f32.mrb[8].mxu1 }
 0x1ff   :  { %v419_v54 = vadd.f32 %v418_v53, %v326_v47  ;;  %v2027_v55 = vpop.f32.mrb[9].mxu1  ;;  %2030 = vmatpush3.bf16.msra.mxu0 %v2406_v15  ;;  %2031 = vmatprep.mubr.msk.bf16.mxu0 %vm2341_vm1, %v2340_v1 }
 0x200   :  { %v421_v56 = vpop.f32.mrb[10].mxu1  ;;  %2041 = vmatprep.subr.bf16.mxu0 %v2340_v1 }
 0x201   :  { %v424_v57 = vadd.f32 %v2410_v16, %v419_v54  ;;  %v2028_v58 = vpop.f32.mrb[11].mxu1 }
 0x203   :  { %2236 = vtanh.f32 %v424_v57 }
 0x206   :  { %v507_v61 = vpop.f32.mrb[12].mxu1 }
 0x207   :  { %v2039_v63 = vpop.f32.mrb[13].mxu1  ;;  %v596_v6 = vadd.f32 %v507_v61, %v95_v4 }
 0x208   :  { %v510_v0 = vpop.f32.mrb[14].mxu1 }
 0x209   :  { %v2040_v2 = vpop.f32.mrb[15].mxu1  ;;  %2238 = vtanh.f32 %v596_v6 }
 0x20d   :  { %v2237_v5 = vpop.eup %2236 }
 0x20e   :  { %v426_v7 = vpack.c.bf16 %v2237_v5, %v2237_v5 }
 0x210   :  { %2032 = vmatmul.mubr.msk.bf16.vlgmr.msra.gmra.mrb[12].mxu0 %vm148_vm3, %v426_v7 }
 0x211   :  { %2042 = vmatpush3.bf16.msra.mxu0 %v2415_v35  ;;  %2043 = vmatprep.mubr.msk.bf16.mxu0 %vm2341_vm1, %v2340_v1 }
 0x212   :  { %2053 = vmatprep.subr.bf16.mxu0 %v2340_v1 }
 0x213   :  { %v2239_v8 = vpop.eup %2238 }
 0x214   :  { %v598_v9 = vpack.c.bf16 %v2239_v8, %v2239_v8 }
 0x218   :  { %2044 = vmatmul.mubr.msk.bf16.vlgmr.msra.gmra.mrb[16].mxu0 %vm148_vm3, %v426_v7 }
 0x219   :  { %2054 = vmatpush3.bf16.msra.mxu0 %v2389_v3  ;;  %2055 = vmatprep.mubr.msk.bf16.mxu0 %vm2341_vm1, %v2340_v1 }
 0x21a   :  { %2065 = vmatprep.subr.bf16.mxu0 %v2340_v1 }
 0x220   :  { %2056 = vmatmul.mubr.msk.bf16.vlgmr.msra.gmra.mrb[20].mxu0 %vm148_vm3, %v598_v9 }
 0x221   :  { %2066 = vmatpush3.bf16.msra.mxu0 %v2395_v12  ;;  %2067 = vmatprep.mubr.msk.bf16.mxu0 %vm2341_vm1, %v2340_v1 }
 0x222   :  { %2077 = vmatprep.subr.bf16.mxu0 %v2340_v1 }
 0x228   :  { %2068 = vmatmul.mubr.msk.bf16.vlgmr.msra.gmra.mrb[24].mxu0 %vm148_vm3, %v598_v9 }
 0x229   :  { %2078 = vmatpush3.bf16.msra.mxu0 %v2436_v40  ;;  %2079 = vmatprep.mubr.msk.bf16.mxu0 %vm2341_vm1, %v2340_v1 }
 0x22a   :  { %2089 = vmatprep.subr.bf16.mxu0 %v2340_v1 }
 0x2d1   :  { %v372_v10 = vpop.f32.mrb[8].mxu0 }
 0x2d2   :  { %v2021_v11 = vpop.f32.mrb[9].mxu0 }
 0x2d3   :  { %v375_v13 = vpop.f32.mrb[10].mxu0  ;;  %v111_v11 = vld [vmem:[%s110_s21] sm:$0x1] }
 0x2d4   :  { %v2022_v14 = vpop.f32.mrb[11].mxu0  ;;  %v113_v13 = vrot.slane %v111_v11, 7 }
 0x2e3   :  { %v464_v17 = vpop.f32.mrb[12].mxu0 }
 0x2e4   :  { %v465_v18 = vadd.f32 %v464_v17, %v372_v10  ;;  %v2033_v19 = vpop.f32.mrb[13].mxu0  ;;  %v108_v17 = vld [vmem:[%s107_s22] sm:$0x1] }
 0x2e5   :  { %v467_v20 = vpop.f32.mrb[14].mxu0 }
 0x2e6   :  { %v470_v21 = vadd.f32 %v2442_v41, %v465_v18  ;;  %v2034_v22 = vpop.f32.mrb[15].mxu0 }
 0x2e8   :  { %2240 = vtanh.f32 %v470_v21  ;;  %v115_v21 = vsel %vm74_vm2, %v108_v17, %v113_v13 }
 0x2eb   :  { %v547_v23 = vpop.f32.mrb[16].mxu0 }
 0x2ec   :  { %v2045_v24 = vpop.f32.mrb[17].mxu0 }
 0x2ed   :  { %v550_v25 = vpop.f32.mrb[18].mxu0 }
 0x2ee   :  { %v2046_v26 = vpop.f32.mrb[19].mxu0 }
 0x2f2   :  { %v2241_v27 = vpop.eup %2240 }
 0x2f3   :  { %v472_v28 = vpack.c.bf16 %v2241_v27, %v2241_v27  ;;  %v636_v29 = vpop.f32.mrb[20].mxu0 }
 0x2f4   :  { %v637_v30 = vadd.f32 %v636_v29, %v547_v23  ;;  %v2057_v31 = vpop.f32.mrb[21].mxu0 }
 0x2f5   :  { %2050 = vmatmul.mubr.msk.bf16.vlgmr.msra.gmra.mrb[16].mxu1 %vm148_vm3, %v472_v28  ;;  %v639_v32 = vpop.f32.mrb[22].mxu0 }
 0x2f6   :  { %v642_v33 = vadd.f32 %v2410_v16, %v637_v30  ;;  %v2058_v34 = vpop.f32.mrb[23].mxu0  ;;  %2060 = vmatpush3.bf16.msra.mxu1 %v2406_v15  ;;  %2061 = vmatprep.mubr.msk.bf16.mxu1 %vm2341_vm1, %v2340_v1 }
 0x2f7   :  { %2071 = vmatprep.subr.bf16.mxu1 %v2340_v1 }
 0x2f8   :  { %2242 = vtanh.f32 %v642_v33 }
 0x2fb   :  { %v725_v38 = vpop.f32.mrb[24].mxu0 }
 0x2fc   :  { %v2069_v42 = vpop.f32.mrb[25].mxu0  ;;  %v814_v47 = vadd.f32 %v725_v38, %v105_v45 }
 0x2fd   :  { %v728_v43 = vpop.f32.mrb[26].mxu0 }
 0x2fe   :  { %v2070_v44 = vpop.f32.mrb[27].mxu0  ;;  %2244 = vtanh.f32 %v814_v47 }
 0x302   :  { %v2243_v46 = vpop.eup %2242 }
 0x303   :  { %v644_v48 = vpack.c.bf16 %v2243_v46, %v2243_v46 }
 0x305   :  { %2062 = vmatmul.mubr.msk.bf16.vlgmr.msra.gmra.mrb[20].mxu1 %vm148_vm3, %v644_v48 }
 0x306   :  { %2072 = vmatpush3.bf16.msra.mxu1 %v2415_v35  ;;  %2073 = vmatprep.mubr.msk.bf16.mxu1 %vm2341_vm1, %v2340_v1 }
 0x307   :  { %2083 = vmatprep.subr.bf16.mxu1 %v2340_v1 }
 0x308   :  { %v2245_v49 = vpop.eup %2244 }
 0x309   :  { %v816_v50 = vpack.c.bf16 %v2245_v49, %v2245_v49 }
 0x30d   :  { %2074 = vmatmul.mubr.msk.bf16.vlgmr.msra.gmra.mrb[24].mxu1 %vm148_vm3, %v644_v48 }
 0x30e   :  { %2084 = vmatpush3.bf16.msra.mxu1 %v2389_v3  ;;  %2085 = vmatprep.mubr.msk.bf16.mxu1 %vm2341_vm1, %v2340_v1 }
 0x30f   :  { %2095 = vmatprep.subr.bf16.mxu1 %v2340_v1 }
 0x315   :  { %2086 = vmatmul.mubr.msk.bf16.vlgmr.msra.gmra.mrb[28].mxu1 %vm148_vm3, %v816_v50 }
 0x316   :  { %2096 = vmatpush3.bf16.msra.mxu1 %v2395_v12  ;;  %2097 = vmatprep.mubr.msk.bf16.mxu1 %vm2341_vm1, %v2340_v1 }
 0x317   :  { %2107 = vmatprep.subr.bf16.mxu1 %v2340_v1 }
 0x31d   :  { %2098 = vmatmul.mubr.msk.bf16.vlgmr.msra.gmra.mrb[32].mxu1 %vm148_vm3, %v816_v50 }
 0x31e   :  { %2108 = vmatpush3.bf16.msra.mxu1 %v2436_v40  ;;  %2109 = vmatprep.mubr.msk.bf16.mxu1 %vm2341_vm1, %v2340_v1 }
 0x31f   :  { %2119 = vmatprep.subr.bf16.mxu1 %v2340_v1 }
 0x3c8   :  { %v590_v51 = vpop.f32.mrb[16].mxu1 }
 0x3c9   :  { %v2051_v52 = vpop.f32.mrb[17].mxu1 }
 0x3ca   :  { %v593_v53 = vpop.f32.mrb[18].mxu1  ;;  %v121_v52 = vld [vmem:[%s120_s25] sm:$0x1] }
 0x3cb   :  { %v2052_v54 = vpop.f32.mrb[19].mxu1  ;;  %v123_v53 = vrot.slane %v121_v52, 7 }
 0x3d8   :  { %v682_v55 = vpop.f32.mrb[20].mxu1 }
 0x3d9   :  { %v683_v56 = vadd.f32 %v682_v55, %v590_v51  ;;  %v2063_v57 = vpop.f32.mrb[21].mxu1  ;;  %v118_v55 = vld [vmem:[%s117_s26] sm:$0x1] }
 0x3da   :  { %v685_v58 = vpop.f32.mrb[22].mxu1 }
 0x3db   :  { %v688_v59 = vadd.f32 %v2442_v41, %v683_v56  ;;  %v2064_v60 = vpop.f32.mrb[23].mxu1 }
 0x3dd   :  { %2246 = vtanh.f32 %v688_v59  ;;  %v125_v59 = vsel %vm74_vm2, %v118_v55, %v123_v53 }
 0x3e0   :  { %v765_v61 = vpop.f32.mrb[24].mxu1 }
 0x3e1   :  { %v2075_v62 = vpop.f32.mrb[25].mxu1 }
 0x3e2   :  { %v768_v63 = vpop.f32.mrb[26].mxu1 }
 0x3e3   :  { %v2076_v0 = vpop.f32.mrb[27].mxu1 }
 0x3e7   :  { %v2247_v2 = vpop.eup %2246 }
 0x3e8   :  { %v690_v4 = vpack.c.bf16 %v2247_v2, %v2247_v2  ;;  %v854_v5 = vpop.f32.mrb[28].mxu1 }
 0x3e9   :  { %v855_v6 = vadd.f32 %v854_v5, %v765_v61  ;;  %v2087_v7 = vpop.f32.mrb[29].mxu1 }
 0x3ea   :  { %2080 = vmatmul.mubr.msk.bf16.vlgmr.msra.gmra.mrb[28].mxu0 %vm148_vm3, %v690_v4  ;;  %v857_v8 = vpop.f32.mrb[30].mxu1 }
 0x3eb   :  { %v860_v9 = vadd.f32 %v2410_v16, %v855_v6  ;;  %v2088_v10 = vpop.f32.mrb[31].mxu1  ;;  %2090 = vmatpush3.bf16.msra.mxu0 %v2406_v15  ;;  %2091 = vmatprep.mubr.msk.bf16.mxu0 %vm2341_vm1, %v2340_v1 }
 0x3ec   :  { %2101 = vmatprep.subr.bf16.mxu0 %v2340_v1 }
 0x3ed   :  { %2248 = vtanh.f32 %v860_v9 }
 0x3f0   :  { %v943_v14 = vpop.f32.mrb[32].mxu1 }
 0x3f1   :  { %v2099_v18 = vpop.f32.mrb[33].mxu1  ;;  %v1032_v23 = vadd.f32 %v943_v14, %v115_v21 }
 0x3f2   :  { %v946_v19 = vpop.f32.mrb[34].mxu1 }
 0x3f3   :  { %v2100_v20 = vpop.f32.mrb[35].mxu1  ;;  %2250 = vtanh.f32 %v1032_v23 }
 0x3f7   :  { %v2249_v22 = vpop.eup %2248 }
 0x3f8   :  { %v862_v24 = vpack.c.bf16 %v2249_v22, %v2249_v22 }
 0x3fa   :  { %2092 = vmatmul.mubr.msk.bf16.vlgmr.msra.gmra.mrb[32].mxu0 %vm148_vm3, %v862_v24 }
 0x3fb   :  { %2102 = vmatpush3.bf16.msra.mxu0 %v2415_v35  ;;  %2103 = vmatprep.mubr.msk.bf16.mxu0 %vm2341_vm1, %v2340_v1 }
 0x3fc   :  { %2113 = vmatprep.subr.bf16.mxu0 %v2340_v1 }
 0x3fd   :  { %v2251_v25 = vpop.eup %2250 }
 0x3fe   :  { %v1034_v26 = vpack.c.bf16 %v2251_v25, %v2251_v25 }
 0x402   :  { %2104 = vmatmul.mubr.msk.bf16.vlgmr.msra.gmra.mrb[36].mxu0 %vm148_vm3, %v862_v24 }
 0x403   :  { %2114 = vmatpush3.bf16.msra.mxu0 %v2389_v3  ;;  %2115 = vmatprep.mubr.msk.bf16.mxu0 %vm2341_vm1, %v2340_v1 }
 0x404   :  { %2125 = vmatprep.subr.bf16.mxu0 %v2340_v1 }
 0x40a   :  { %2116 = vmatmul.mubr.msk.bf16.vlgmr.msra.gmra.mrb[40].mxu0 %vm148_vm3, %v1034_v26 }
 0x40b   :  { %2126 = vmatpush3.bf16.msra.mxu0 %v2395_v12  ;;  %2127 = vmatprep.mubr.msk.bf16.mxu0 %vm2341_vm1, %v2340_v1 }
 0x40c   :  { %2137 = vmatprep.subr.bf16.mxu0 %v2340_v1 }
 0x412   :  { %2128 = vmatmul.mubr.msk.bf16.vlgmr.msra.gmra.mrb[44].mxu0 %vm148_vm3, %v1034_v26 }
 0x413   :  { %2138 = vmatpush3.bf16.msra.mxu0 %v2436_v40  ;;  %2139 = vmatprep.mubr.msk.bf16.mxu0 %vm2341_vm1, %v2340_v1 }
 0x414   :  { %2149 = vmatprep.subr.bf16.mxu0 %v2340_v1 }
 0x4bd   :  { %v808_v27 = vpop.f32.mrb[28].mxu0 }
 0x4be   :  { %v2081_v28 = vpop.f32.mrb[29].mxu0 }
 0x4bf   :  { %v811_v29 = vpop.f32.mrb[30].mxu0  ;;  %v131_v28 = vld [vmem:[%s130_s0] sm:$0x1] }
 0x4c0   :  { %v2082_v30 = vpop.f32.mrb[31].mxu0  ;;  %v133_v29 = vrot.slane %v131_v28, 7 }
 0x4cd   :  { %v900_v31 = vpop.f32.mrb[32].mxu0 }
 0x4ce   :  { %v901_v32 = vadd.f32 %v900_v31, %v808_v27  ;;  %v2093_v33 = vpop.f32.mrb[33].mxu0  ;;  %v128_v31 = vld [vmem:[%s127_s29] sm:$0x1] }
 0x4cf   :  { %v903_v34 = vpop.f32.mrb[34].mxu0 }
 0x4d0   :  { %v906_v36 = vadd.f32 %v2442_v41, %v901_v32  ;;  %v2094_v37 = vpop.f32.mrb[35].mxu0 }
 0x4d2   :  { %2252 = vtanh.f32 %v906_v36  ;;  %v135_v36 = vsel %vm74_vm2, %v128_v31, %v133_v29 }
 0x4d5   :  { %v983_v38 = vpop.f32.mrb[36].mxu0 }
 0x4d6   :  { %v2105_v39 = vpop.f32.mrb[37].mxu0 }
 0x4d7   :  { %v986_v42 = vpop.f32.mrb[38].mxu0 }
 0x4d8   :  { %v2106_v43 = vpop.f32.mrb[39].mxu0 }
 0x4dc   :  { %v2253_v44 = vpop.eup %2252 }
 0x4dd   :  { %v908_v45 = vpack.c.bf16 %v2253_v44, %v2253_v44  ;;  %v1072_v46 = vpop.f32.mrb[40].mxu0 }
 0x4de   :  { %v1073_v47 = vadd.f32 %v1072_v46, %v983_v38  ;;  %v2117_v48 = vpop.f32.mrb[41].mxu0 }
 0x4df   :  { %2110 = vmatmul.mubr.msk.bf16.vlgmr.msra.gmra.mrb[36].mxu1 %vm148_vm3, %v908_v45  ;;  %v1075_v49 = vpop.f32.mrb[42].mxu0 }
 0x4e0   :  { %v1078_v50 = vadd.f32 %v2410_v16, %v1073_v47  ;;  %v2118_v51 = vpop.f32.mrb[43].mxu0  ;;  %2120 = vmatpush3.bf16.msra.mxu1 %v2406_v15  ;;  %2121 = vmatprep.mubr.msk.bf16.mxu1 %vm2341_vm1, %v2340_v1 }
 0x4e1   :  { %2131 = vmatprep.subr.bf16.mxu1 %v2340_v1 }
 0x4e2   :  { %2254 = vtanh.f32 %v1078_v50 }
 0x4e5   :  { %v1161_v54 = vpop.f32.mrb[44].mxu0 }
 0x4e6   :  { %v2129_v56 = vpop.f32.mrb[45].mxu0  ;;  %v1250_v61 = vadd.f32 %v1161_v54, %v125_v59 }
 0x4e7   :  { %v1164_v57 = vpop.f32.mrb[46].mxu0 }
 0x4e8   :  { %v2130_v58 = vpop.f32.mrb[47].mxu0  ;;  %2256 = vtanh.f32 %v1250_v61 }
 0x4ec   :  { %v2255_v60 = vpop.eup %2254 }
 0x4ed   :  { %v1080_v62 = vpack.c.bf16 %v2255_v60, %v2255_v60 }
 0x4ef   :  { %2122 = vmatmul.mubr.msk.bf16.vlgmr.msra.gmra.mrb[40].mxu1 %vm148_vm3, %v1080_v62 }
 0x4f0   :  { %2132 = vmatpush3.bf16.msra.mxu1 %v2415_v35  ;;  %2133 = vmatprep.mubr.msk.bf16.mxu1 %vm2341_vm1, %v2340_v1 }
 0x4f1   :  { %2143 = vmatprep.subr.bf16.mxu1 %v2340_v1 }
 0x4f2   :  { %v2257_v63 = vpop.eup %2256 }
 0x4f3   :  { %v1252_v0 = vpack.c.bf16 %v2257_v63, %v2257_v63 }
 0x4f7   :  { %2134 = vmatmul.mubr.msk.bf16.vlgmr.msra.gmra.mrb[44].mxu1 %vm148_vm3, %v1080_v62 }
 0x4f8   :  { %2144 = vmatpush3.bf16.msra.mxu1 %v2389_v3  ;;  %2145 = vmatprep.mubr.msk.bf16.mxu1 %vm2341_vm1, %v2340_v1 }
 0x4f9   :  { %2155 = vmatprep.subr.bf16.mxu1 %v2340_v1 }
 0x4ff   :  { %2146 = vmatmul.mubr.msk.bf16.vlgmr.msra.gmra.mrb[48].mxu1 %vm148_vm3, %v1252_v0 }
 0x500   :  { %2156 = vmatpush3.bf16.msra.mxu1 %v2395_v12  ;;  %2157 = vmatprep.mubr.msk.bf16.mxu1 %vm2341_vm1, %v2340_v1 }
 0x501   :  { %2167 = vmatprep.subr.bf16.mxu1 %v2340_v1 }
 0x507   :  { %2158 = vmatmul.mubr.msk.bf16.vlgmr.msra.gmra.mrb[52].mxu1 %vm148_vm3, %v1252_v0  ;;  %v141_v0 = vld [vmem:[%s140_s4] sm:$0x1] }
 0x508   :  { %2168 = vmatpush3.bf16.msra.mxu1 %v2436_v40  ;;  %2169 = vmatprep.mubr.msk.bf16.mxu1 %vm2341_vm1, %v2340_v1 }
 0x509   :  { %2179 = vmatprep.subr.bf16.mxu1 %v2340_v1 }
 0x5b2   :  { %v1026_v2 = vpop.f32.mrb[36].mxu1 }
 0x5b3   :  { %v2111_v4 = vpop.f32.mrb[37].mxu1 }
 0x5b4   :  { %v1029_v5 = vpop.f32.mrb[38].mxu1 }
 0x5b5   :  { %v2112_v6 = vpop.f32.mrb[39].mxu1  ;;  %v138_v5 = vld [vmem:[%s137_s5] sm:$0x1] }
 0x5c2   :  { %v1118_v7 = vpop.f32.mrb[40].mxu1 }
 0x5c3   :  { %v1119_v8 = vadd.f32 %v1118_v7, %v1026_v2  ;;  %v2123_v9 = vpop.f32.mrb[41].mxu1  ;;  %v143_v2 = vrot.slane %v141_v0, 7 }
 0x5c4   :  { %v1121_v10 = vpop.f32.mrb[42].mxu1 }
 0x5c5   :  { %v1124_v11 = vadd.f32 %v2442_v41, %v1119_v8  ;;  %v2124_v13 = vpop.f32.mrb[43].mxu1  ;;  %v145_v9 = vsel %vm74_vm2, %v138_v5, %v143_v2 }
 0x5c7   :  { %2258 = vtanh.f32 %v1124_v11 }
 0x5ca   :  { %v1201_v14 = vpop.f32.mrb[44].mxu1 }
 0x5cb   :  { %v2135_v17 = vpop.f32.mrb[45].mxu1 }
 0x5cc   :  { %v1204_v18 = vpop.f32.mrb[46].mxu1 }
 0x5cd   :  { %v2136_v19 = vpop.f32.mrb[47].mxu1 }
 0x5d1   :  { %v2259_v20 = vpop.eup %2258 }
 0x5d2   :  { %v1126_v21 = vpack.c.bf16 %v2259_v20, %v2259_v20  ;;  %v1290_v22 = vpop.f32.mrb[48].mxu1 }
 0x5d3   :  { %v1291_v23 = vadd.f32 %v1290_v22, %v1201_v14  ;;  %v2147_v24 = vpop.f32.mrb[49].mxu1 }
 0x5d4   :  { %2140 = vmatmul.mubr.msk.bf16.vlgmr.msra.gmra.mrb[48].mxu0 %vm148_vm3, %v1126_v21  ;;  %v1293_v25 = vpop.f32.mrb[50].mxu1 }
 0x5d5   :  { %v1296_v26 = vadd.f32 %v2410_v16, %v1291_v23  ;;  %v2148_v27 = vpop.f32.mrb[51].mxu1  ;;  %2150 = vmatpush3.bf16.msra.mxu0 %v2406_v15  ;;  %2151 = vmatprep.mubr.msk.bf16.mxu0 %vm2341_vm1, %v2340_v1 }
 0x5d6   :  { %2161 = vmatprep.subr.bf16.mxu0 %v2340_v1 }
 0x5d7   :  { %2260 = vtanh.f32 %v1296_v26 }
 0x5da   :  { %v1379_v30 = vpop.f32.mrb[52].mxu1 }
 0x5db   :  { %v2159_v32 = vpop.f32.mrb[53].mxu1  ;;  %v1468_v38 = vadd.f32 %v1379_v30, %v135_v36 }
 0x5dc   :  { %v1382_v33 = vpop.f32.mrb[54].mxu1 }
 0x5dd   :  { %v2160_v34 = vpop.f32.mrb[55].mxu1  ;;  %2262 = vtanh.f32 %v1468_v38 }
 0x5e1   :  { %v2261_v37 = vpop.eup %2260 }
 0x5e2   :  { %v1298_v39 = vpack.c.bf16 %v2261_v37, %v2261_v37 }
 0x5e4   :  { %2152 = vmatmul.mubr.msk.bf16.vlgmr.msra.gmra.mrb[52].mxu0 %vm148_vm3, %v1298_v39 }
 0x5e5   :  { %2162 = vmatpush3.bf16.msra.mxu0 %v2415_v35  ;;  %2163 = vmatprep.mubr.msk.bf16.mxu0 %vm2341_vm1, %v2340_v1 }
 0x5e6   :  { %2173 = vmatprep.subr.bf16.mxu0 %v2340_v1 }
 0x5e7   :  { %v2263_v42 = vpop.eup %2262 }
 0x5e8   :  { %v1470_v43 = vpack.c.bf16 %v2263_v42, %v2263_v42 }
 0x5ec   :  { %2164 = vmatmul.mubr.msk.bf16.vlgmr.msra.gmra.mrb[56].mxu0 %vm148_vm3, %v1298_v39 }
 0x5ed   :  { %2174 = vmatpush3.bf16.msra.mxu0 %v2389_v3  ;;  %2175 = vmatprep.mubr.msk.bf16.mxu0 %vm2341_vm1, %v2340_v1 }
 0x5ee   :  { %2185 = vmatprep.subr.bf16.mxu0 %v2340_v1 }
 0x5f4   :  { %2176 = vmatmul.mubr.msk.bf16.vlgmr.msra.gmra.mrb[60].mxu0 %vm148_vm3, %v1470_v43 }
 0x5f5   :  { %2186 = vmatpush3.bf16.msra.mxu0 %v2395_v12  ;;  %2187 = vmatprep.mubr.msk.bf16.mxu0 %vm2341_vm1, %v2340_v1 }
 0x5f6   :  { %2197 = vmatprep.subr.bf16.mxu0 %v2340_v1 }
 0x5fc   :  { %2188 = vmatmul.mubr.msk.bf16.vlgmr.msra.gmra.mrb[64].mxu0 %vm148_vm3, %v1470_v43  ;;  %v48_v43 = vld [vmem:[#allocation6 + $0x60] sm:$0xff] }
 0x5fd   :  { %2198 = vmatpush3.bf16.msra.mxu0 %v2436_v40  ;;  %2199 = vmatprep.mubr.msk.bf16.mxu0 %vm2341_vm1, %v2340_v1 }
 0x5fe   :  { %2209 = vmatprep.subr.bf16.mxu0 %v2340_v1 }
 0x6a7   :  { %v1244_v44 = vpop.f32.mrb[48].mxu0 }
 0x6a8   :  { %v2141_v45 = vpop.f32.mrb[49].mxu0 }
 0x6a9   :  { %v1247_v46 = vpop.f32.mrb[50].mxu0 }
 0x6aa   :  { %v2142_v47 = vpop.f32.mrb[51].mxu0 }
 0x6b7   :  { %v1336_v48 = vpop.f32.mrb[52].mxu0 }
 0x6b8   :  { %v1337_v12 = vadd.f32 %v1336_v48, %v1244_v44  ;;  %v2153_v49 = vpop.f32.mrb[53].mxu0  ;;  %v49_v44 = vpack.c.bf16 %v48_v43, %v48_v43 }
 0x6b9   :  { %v1339_v50 = vpop.f32.mrb[54].mxu0 }
 0x6ba   :  { %v1342_v51 = vadd.f32 %v2442_v41, %v1337_v12  ;;  %v2154_v52 = vpop.f32.mrb[55].mxu0  ;;  %v1785_v45 = vsel %vm152_vm0, %v49_v44, 0 }
 0x6bc   :  { %2264 = vtanh.f32 %v1342_v51 }
 0x6bf   :  { %v1419_v53 = vpop.f32.mrb[56].mxu0 }
 0x6c0   :  { %v2165_v54 = vpop.f32.mrb[57].mxu0 }
 0x6c1   :  { %v1422_v40 = vpop.f32.mrb[58].mxu0  ;;  %v1863_v54 = vld [vmem:[#allocation6 + $0x6a] ss:$0 sm:$0xff] }
 0x6c2   :  { %v2166_v55 = vpop.f32.mrb[59].mxu0 }
 0x6c6   :  { %v2265_v56 = vpop.eup %2264 }
 0x6c7   :  { %v1344_v57 = vpack.c.bf16 %v2265_v56, %v2265_v56  ;;  %v1508_v58 = vpop.f32.mrb[60].mxu0 }
 0x6c8   :  { %v1509_v59 = vadd.f32 %v1508_v58, %v1419_v53  ;;  %v2177_v60 = vpop.f32.mrb[61].mxu0 }
 0x6c9   :  { %2170 = vmatmul.mubr.msk.bf16.vlgmr.msra.gmra.mrb[56].mxu1 %vm148_vm3, %v1344_v57  ;;  %v1511_v61 = vpop.f32.mrb[62].mxu0 }
 0x6ca   :  { %v1514_v62 = vadd.f32 %v2410_v16, %v1509_v59  ;;  %v2178_v63 = vpop.f32.mrb[63].mxu0  ;;  %2180 = vmatpush3.bf16.msra.mxu1 %v2406_v15  ;;  %2181 = vmatprep.mubr.msk.bf16.mxu1 %vm2341_vm1, %v2340_v1 }
 0x6cb   :  { %2191 = vmatprep.subr.bf16.mxu1 %v2340_v1 }
 0x6cc   :  { %2266 = vtanh.f32 %v1514_v62 }
 0x6cf   :  { %v1597_v4 = vpop.f32.mrb[64].mxu0 }
 0x6d0   :  { %v2189_v6 = vpop.f32.mrb[65].mxu0  ;;  %v1686_v11 = vadd.f32 %v1597_v4, %v145_v9 }
 0x6d1   :  { %v1600_v7 = vpop.f32.mrb[66].mxu0 }
 0x6d2   :  { %v2190_v8 = vpop.f32.mrb[67].mxu0  ;;  %2268 = vtanh.f32 %v1686_v11 }
 0x6d6   :  { %v2267_v10 = vpop.eup %2266 }
 0x6d7   :  { %v1516_v13 = vpack.c.bf16 %v2267_v10, %v2267_v10 }
 0x6d9   :  { %2182 = vmatmul.mubr.msk.bf16.vlgmr.msra.gmra.mrb[60].mxu1 %vm148_vm3, %v1516_v13 }
 0x6da   :  { %2192 = vmatpush3.bf16.msra.mxu1 %v2415_v35  ;;  %2193 = vmatprep.mubr.msk.bf16.mxu1 %vm2341_vm1, %v2340_v1 }
 0x6db   :  { %2203 = vmatprep.subr.bf16.mxu1 %v2340_v1 }
 0x6dc   :  { %v2269_v14 = vpop.eup %2268 }
 0x6dd   :  { %v1688_v17 = vpack.c.bf16 %v2269_v14, %v2269_v14 }
 0x6e1   :  { %2194 = vmatmul.mubr.msk.bf16.vlgmr.msra.gmra.mrb[64].mxu1 %vm148_vm3, %v1516_v13 }
 0x6e2   :  { %2204 = vmatpush3.bf16.msra.mxu1 %v2389_v3  ;;  %2205 = vmatprep.mubr.msk.bf16.mxu1 %vm2341_vm1, %v2340_v1 }
 0x6e3   :  { %2215 = vmatprep.subr.bf16.mxu1 %v2340_v1 }
 0x6e9   :  { %2206 = vmatmul.mubr.msk.bf16.vlgmr.msra.gmra.mrb[68].mxu1 %vm148_vm3, %v1688_v17 }
 0x6ea   :  { %2217 = vmatprep.mubr.msk.bf16.mxu1 %vm2341_vm1, %v2340_v1  ;;  %2216 = vmatpush3.bf16.msra.mxu1 %v1785_v45 }
 0x79c   :  { %v1462_v35 = vpop.f32.mrb[56].mxu1 }
 0x79d   :  { %v2171_v18 = vpop.f32.mrb[57].mxu1 }
 0x79e   :  { %v1465_v19 = vpop.f32.mrb[58].mxu1 }
 0x79f   :  { %v2172_v20 = vpop.f32.mrb[59].mxu1 }
 0x7ac   :  { %v1554_v21 = vpop.f32.mrb[60].mxu1 }
 0x7ad   :  { %v1555_v22 = vadd.f32 %v1554_v21, %v1462_v35  ;;  %v2183_v23 = vpop.f32.mrb[61].mxu1 }
 0x7ae   :  { %v1557_v3 = vpop.f32.mrb[62].mxu1 }
 0x7af   :  { %v1560_v24 = vadd.f32 %v2442_v41, %v1555_v22  ;;  %v2184_v25 = vpop.f32.mrb[63].mxu1 }
 0x7b1   :  { %2270 = vtanh.f32 %v1560_v24 }
 0x7b4   :  { %v1637_v26 = vpop.f32.mrb[64].mxu1 }
 0x7b5   :  { %v2195_v27 = vpop.f32.mrb[65].mxu1 }
 0x7b6   :  { %v1640_v28 = vpop.f32.mrb[66].mxu1 }
 0x7b7   :  { %v2196_v29 = vpop.f32.mrb[67].mxu1 }
 0x7bb   :  { %v2271_v30 = vpop.eup %2270 }
 0x7bc   :  { %v1562_v31 = vpack.c.bf16 %v2271_v30, %v2271_v30  ;;  %v1726_v32 = vpop.f32.mrb[68].mxu1 }
 0x7bd   :  { %v1727_v33 = vadd.f32 %v1726_v32, %v1637_v26  ;;  %v2207_v34 = vpop.f32.mrb[69].mxu1 }
 0x7be   :  { %2200 = vmatmul.mubr.msk.bf16.vlgmr.msra.gmra.mrb[68].mxu0 %vm148_vm3, %v1562_v31  ;;  %v1729_v36 = vpop.f32.mrb[70].mxu1 }
 0x7bf   :  { %v1732_v37 = vadd.f32 %v2410_v16, %v1727_v33  ;;  %v2208_v38 = vpop.f32.mrb[71].mxu1  ;;  %2210 = vmatpush3.bf16.msra.mxu0 %v2406_v15  ;;  %2211 = vmatprep.mubr.msk.bf16.mxu0 %vm2341_vm1, %v2340_v1 }
 0x7c1   :  { %2272 = vtanh.f32 %v1732_v37 }
 0x7cb   :  { %v2273_v39 = vpop.eup %2272 }
 0x7cc   :  { %v1734_v42 = vpack.c.bf16 %v2273_v39, %v2273_v39 }
 0x7ce   :  { %2212 = vmatmul.mubr.msk.bf16.vlgmr.msra.gmra.mrb[72].mxu0 %vm148_vm3, %v1734_v42 }
 0x891   :  { %v1680_v46 = vpop.f32.mrb[68].mxu0 }
 0x892   :  { %v2201_v47 = vpop.f32.mrb[69].mxu0 }
 0x893   :  { %v1683_v48 = vpop.f32.mrb[70].mxu0 }
 0x894   :  { %v2202_v16 = vpop.f32.mrb[71].mxu0 }
 0x8a1   :  { %v1772_v12 = vpop.f32.mrb[72].mxu0 }
 0x8a2   :  { %v1773_v49 = vadd.f32 %v1772_v12, %v1680_v46  ;;  %v2213_v15 = vpop.f32.mrb[73].mxu0 }
 0x8a3   :  { %v1775_v50 = vpop.f32.mrb[74].mxu0 }
 0x8a4   :  { %v1778_v1 = vadd.f32 %v2442_v41, %v1773_v49  ;;  %v2214_v51 = vpop.f32.mrb[75].mxu0 }
 0x8a6   :  { %2274 = vtanh.f32 %v1778_v1 }
 0x8b0   :  { %v2275_v52 = vpop.eup %2274 }
 0x8b1   :  { %v1780_v53 = vpack.c.bf16 %v2275_v52, %v2275_v52 }
 0x8b3   :  { %2218 = vmatmul.mubr.msk.bf16.vlgmr.msra.gmra.mrb[72].mxu1 %vm148_vm3, %v1780_v53 }
 0x986   :  { %v1821_v40 = vpop.f32.mrb[72].mxu1 }
 0x987   :  { %v1822_v55 = vadd.f32 %v1863_v54, %v1821_v40  ;;  %v2219_v56 = vpop.f32.mrb[73].mxu1 }
 0x988   :  { %v1824_v57 = vpop.f32.mrb[74].mxu1 }
 0x989   :  { %v2220_v58 = vpop.f32.mrb[75].mxu1  ;;  %1828 = vst.msk [vmem:[#allocation7] sm:$0x3] %vm1827_vm4, %v1822_v55 }
 0x98a   :  { %2319 = shalt.err (!%p2316_p1)
}
 0x98b   :  { %s2320_s10 = scalar_lea.hbm %s2629_s2, 32 }
 0x98c   :  { %p2321_p2 = scmp.ne.s32.totalorder %s2629_s2, %s2320_s10  ;;  %p2324_p3 = scmp.lt.u32.totalorder %s2320_s10, %s2629_s2 }
 0x98e   :  { %p2326_p4 = pnand %p2324_p3, %p2321_p2 }
 0x990   :  { %2329 = shalt.err (!%p2326_p4)
}
 0x991   :  { %1838 = dma.vmem_to_hbm [thread:$0]  %s1836_s6, 32, %s2629_s2, [#allocation4]  }
 0x992   :  { %2334 = dma.done.wait [#allocation4], 32  }
 0x993   :  { %2335 = vsyncadd [#allocation4], 4294967264 }
 0x994   :  { %1842 = vsyncpa [#allocation3], 1 }
 0x995   :  { %1843 = vsyncpa [#allocation4], 1 }
 0x996   :  { %1844 = vsyncpa [#allocation5], 1 }

</bundles_post_ra>
